<compile_context>
chip_gen: v7x
topology: tpu7x:2x2x1
jax: 0.10.0
libtpu: 0.0.40
codegen_flags: <defaults>
</compile_context>

<pallas_src>
import functools

import jax
import jax.numpy as jnp
from jax.experimental import pallas as pl
from jax.experimental.pallas import tpu as pltpu


def _decoder_kernel(num_layers, chunk, emb_ref, h0_ref, Ht_ref, *rest):
    """One grid step == `chunk` decoder timesteps."""
    n_w = 2 * num_layers
    w_refs = rest[:n_w]              # per layer: wih^T (In_i,3H), whh^T (H,3H)
    biases_ref = rest[n_w]           # (L, 2, 3H)   [bih_i ; bhh_i]
    attw_ref = rest[n_w + 1]         # (3, H, H)    [W1^T ; W2[:, :H]^T ; W2[:, H:]^T]
    out_ref = rest[n_w + 2]          # (chunk, B, H)
    hn_ref = rest[n_w + 3]           # (L, B, H)
    h_state = rest[n_w + 4]          # VMEM scratch (L, B, H), carried across grid steps
    q_scr = rest[n_w + 5]            # VMEM scratch (chunk, B, H) — staged GRU outputs
    c_scr = rest[n_w + 6]            # VMEM scratch (chunk, B, H) — staged contexts

    Hd = h_state.shape[-1]
    B = h_state.shape[1]
    t = pl.program_id(0)

    @pl.when(t == 0)
    def _():
        h_state[...] = h0_ref[...]

    # Hoist chunk-invariant operands out of the unrolled time loop.
    Henc = Ht_ref[...]                                   # (B, S, H)
    gate_params = []
    for i in range(num_layers):
        wih = w_refs[2 * i][...]                          # (In_i, 3H)
        whh = w_refs[2 * i + 1][...]                      # (H, 3H)
        bl = biases_ref[i]                                # (2, 3H)
        gate_params.append((wih, whh, bl[0:1], bl[1:2]))
    w1t = attw_ref[0]                                     # W1^T
    w2c = attw_ref[1]                                     # W2[:, :H]^T
    w2q = attw_ref[2]                                     # W2[:, H:]^T

    # ---- Phase 1: sequential StackingGRUCell over the chunk (packed gates) ----
    hs = [h_state[i] for i in range(num_layers)]
    for j in range(chunk):
        x = emb_ref[j]                                    # (B, In) embedded token
        for i in range(num_layers):
            wih, whh, bi, bh = gate_params[i]
            hprev = hs[i]
            gi = jnp.dot(x, wih, preferred_element_type=jnp.float32) + bi      # (B, 3H)
            gh = jnp.dot(hprev, whh, preferred_element_type=jnp.float32) + bh  # (B, 3H)
            r = jax.nn.sigmoid(gi[:, :Hd] + gh[:, :Hd])
            z = jax.nn.sigmoid(gi[:, Hd:2 * Hd] + gh[:, Hd:2 * Hd])
            n = jnp.tanh(gi[:, 2 * Hd:] + r * gh[:, 2 * Hd:])
            hnew = (1.0 - z) * n + z * hprev
            hs[i] = hnew
            x = hnew                                      # inter-layer dropout == identity (eval)
        q_scr[j] = x                                      # stage top-layer output for attention

    for i in range(num_layers):
        h_state[i] = hs[i]

    @pl.when(t == pl.num_programs(0) - 1)
    def _():
        hn_ref[...] = h_state[...]                        # write hn back only once

    # ---- Phase 2: GlobalAttention (MXU) ----
    q_all = q_scr[...]                                    # (chunk, B, H)
    q2 = q_all.reshape(chunk * B, Hd)                     # lane dim unchanged
    q1_all = jnp.dot(q2, w1t, preferred_element_type=jnp.float32)   # batched W1 projection
    q1_3 = q1_all.reshape(chunk, B, Hd)

    for j in range(chunk):
        q1j = q1_3[j][:, None, :]                         # (B, 1, H)
        s = jnp.einsum('bqh,bsh->bqs', q1j, Henc,
                       preferred_element_type=jnp.float32)            # (B, 1, S)  == bmm(H, q1)
        m = jnp.max(s, axis=-1, keepdims=True)
        p = jnp.exp(s - m)
        denom = jnp.sum(p, axis=-1, keepdims=True)
        a = p * pl.reciprocal(denom, approx=True)          # softmax (reciprocal on EUP)
        c = jnp.einsum('bqs,bsh->bqh', a, Henc,
                       preferred_element_type=jnp.float32)             # (B, 1, H)  == bmm(a, H)
        c_scr[j] = c[:, 0, :]

    c2 = c_scr[...].reshape(chunk * B, Hd)
    # L2(cat([c, q])) as split matmuls (avoids in-kernel concat), batched over chunk.
    o2 = jnp.tanh(jnp.dot(c2, w2c, preferred_element_type=jnp.float32)
                  + jnp.dot(q2, w2q, preferred_element_type=jnp.float32))
    # final dropout == identity (eval)
    out_ref[...] = o2.reshape(chunk, B, Hd)


def _pick_chunk(T, max_chunk):
    for tc in range(min(T, max_chunk), 0, -1):
        if T % tc == 0:
            return tc
    return 1


def decoder_forward(tokens, h0, H_enc, params, num_layers, hidden_size, max_chunk=8):
    """tokens: (T, B) int32, h0: (L, B, H), H_enc: (S, B, H)."""
    emb = params["embedding"][tokens]                 # (T, B, In)  gather done in plain JAX
    T, B, In = emb.shape
    L, _, Hd = h0.shape
    Ht = jnp.transpose(H_enc, (1, 0, 2))              # (B, S, H)  == H.transpose(0, 1)
    S = Ht.shape[1]
    TC = _pick_chunk(T, max_chunk)

    # Packed GRU weights: one (In_i, 3H) and one (H, 3H) matmul per layer.
    weights = []
    for i in range(num_layers):
        weights.append(jnp.transpose(params[f"wih_{i}"]))   # (In_i, 3H)
        weights.append(jnp.transpose(params[f"whh_{i}"]))   # (H, 3H)
    biases = jnp.stack(
        [jnp.stack([params[f"bih_{i}"], params[f"bhh_{i}"]], axis=0)
         for i in range(num_layers)], axis=0)               # (L, 2, 3H)
    W1, W2 = params["att_W1"], params["att_W2"]             # (H, H), (H, 2H)
    att_w = jnp.stack([W1.T, W2[:, :Hd].T, W2[:, Hd:].T], axis=0)   # (3, H, H)
    flat = weights + [biases, att_w]

    def const(shape):
        return pl.BlockSpec(tuple(shape), lambda t, _n=len(shape): (0,) * _n)

    in_specs = ([pl.BlockSpec((TC, B, In), lambda t: (t, 0, 0)),
                 const((L, B, Hd)),
                 const((B, S, Hd))]
                + [const(p.shape) for p in flat])
    out_specs = [pl.BlockSpec((TC, B, Hd), lambda t: (t, 0, 0)),
                 const((L, B, Hd))]

    grid_spec = pltpu.PrefetchScalarGridSpec(
        num_scalar_prefetch=0,
        grid=(T // TC,),
        in_specs=in_specs,
        out_specs=out_specs,
        scratch_shapes=[pltpu.VMEM((L, B, Hd), jnp.float32),
                        pltpu.VMEM((TC, B, Hd), jnp.float32),
                        pltpu.VMEM((TC, B, Hd), jnp.float32)],
    )

    out, hn = pl.pallas_call(
        functools.partial(_decoder_kernel, num_layers, TC),
        out_shape=(jax.ShapeDtypeStruct((T, B, Hd), jnp.float32),
                   jax.ShapeDtypeStruct((L, B, Hd), jnp.float32)),
        grid_spec=grid_spec,
        compiler_params=pltpu.CompilerParams(
            dimension_semantics=("arbitrary",)),   # sequential recurrence over time chunks
    )(emb, h0, Ht, *flat)
    return out, hn


# ---------------- pure-JAX reference (mirrors the PyTorch forward) ----------------
def decoder_ref(tokens, h0, H_enc, params, num_layers, hidden):
    emb = params["embedding"][tokens]
    Ht = jnp.transpose(H_enc, (1, 0, 2))
    h = h0
    outs = []
    for t in range(emb.shape[0]):
        x = emb[t]
        hs = []
        for i in range(num_layers):
            wih, whh = params[f"wih_{i}"], params[f"whh_{i}"]
            bih, bhh = params[f"bih_{i}"], params[f"bhh_{i}"]
            gi = x @ wih.T + bih
            gh = h[i] @ whh.T + bhh
            r = jax.nn.sigmoid(gi[:, :hidden] + gh[:, :hidden])
            z = jax.nn.sigmoid(gi[:, hidden:2 * hidden] + gh[:, hidden:2 * hidden])
            n = jnp.tanh(gi[:, 2 * hidden:] + r * gh[:, 2 * hidden:])
            hi = (1.0 - z) * n + z * h[i]
            hs.append(hi)
            x = hi
        h = jnp.stack(hs)
        q = x
        q1 = q @ params["att_W1"].T
        scores = jnp.einsum("bsh,bh->bs", Ht, q1)
        a = jax.nn.softmax(scores, axis=-1)
        c = jnp.einsum("bs,bsh->bh", a, Ht)
        o = jnp.tanh(jnp.concatenate([c, q], axis=1) @ params["att_W2"].T)
        outs.append(o)
    return jnp.stack(outs), h


if __name__ == "__main__":
    # Small shapes consistent with the module.
    VOCAB, INPUT, HIDDEN, LAYERS = 20, 32, 32, 2
    SEQ, BATCH, SRC = 8, 2, 8

    key = jax.random.PRNGKey(0)
    keys = iter(jax.random.split(key, 32))
    scale = 1.0 / jnp.sqrt(HIDDEN)

    params = {"embedding": jax.random.normal(next(keys), (VOCAB, INPUT), jnp.float32) * 0.1,
              "att_W1": jax.random.uniform(next(keys), (HIDDEN, HIDDEN), jnp.float32, -scale, scale),
              "att_W2": jax.random.uniform(next(keys), (HIDDEN, 2 * HIDDEN), jnp.float32, -scale, scale)}
    for i in range(LAYERS):
        in_i = INPUT if i == 0 else HIDDEN
        params[f"wih_{i}"] = jax.random.uniform(next(keys), (3 * HIDDEN, in_i), jnp.float32, -scale, scale)
        params[f"whh_{i}"] = jax.random.uniform(next(keys), (3 * HIDDEN, HIDDEN), jnp.float32, -scale, scale)
        params[f"bih_{i}"] = jax.random.uniform(next(keys), (3 * HIDDEN,), jnp.float32, -scale, scale)
        params[f"bhh_{i}"] = jax.random.uniform(next(keys), (3 * HIDDEN,), jnp.float32, -scale, scale)

    tokens = jax.random.randint(next(keys), (SEQ, BATCH), 0, VOCAB, jnp.int32)
    h0 = jax.random.normal(next(keys), (LAYERS, BATCH, HIDDEN), jnp.float32) * 0.1
    H_enc = jax.random.normal(next(keys), (SRC, BATCH, HIDDEN), jnp.float32) * 0.1

    # max_chunk=4 -> two grid steps, exercising the carried hidden state + final hn write.
    out, hn = decoder_forward(tokens, h0, H_enc, params, LAYERS, HIDDEN, max_chunk=4)
    out = jax.block_until_ready(out)
    hn = jax.block_until_ready(hn)

    ref_out, ref_hn = decoder_ref(tokens, h0, H_enc, params, LAYERS, HIDDEN)
    assert out.shape == (SEQ, BATCH, HIDDEN) and hn.shape == (LAYERS, BATCH, HIDDEN)
    # out tolerance slightly loosened for the approximate (EUP) softmax reciprocal.
    assert jnp.allclose(out, ref_out, rtol=2e-3, atol=2e-3), "output mismatch"
    assert jnp.allclose(hn, ref_hn, rtol=1e-4, atol=1e-4), "hidden-state mismatch"
    print("KERNEL_OK")
</pallas_src>

<mosaic_0001>
module attributes {stable_mosaic.version = 11 : i64} {
  func.func @_decoder_kernel(%arg0: i32, %arg1: memref<4x2x32xf32, #tpu.memory_space<vmem>>, %arg2: memref<2x2x32xf32, #tpu.memory_space<vmem>>, %arg3: memref<2x8x32xf32, #tpu.memory_space<vmem>>, %arg4: memref<32x96xf32, #tpu.memory_space<vmem>>, %arg5: memref<32x96xf32, #tpu.memory_space<vmem>>, %arg6: memref<32x96xf32, #tpu.memory_space<vmem>>, %arg7: memref<32x96xf32, #tpu.memory_space<vmem>>, %arg8: memref<2x2x96xf32, #tpu.memory_space<vmem>>, %arg9: memref<3x32x32xf32, #tpu.memory_space<vmem>>, %arg10: memref<4x2x32xf32, #tpu.memory_space<vmem>>, %arg11: memref<2x2x32xf32, #tpu.memory_space<vmem>>, %arg12: memref<2x2x32xf32, #tpu.memory_space<vmem>>, %arg13: memref<4x2x32xf32, #tpu.memory_space<vmem>>, %arg14: memref<4x2x32xf32, #tpu.memory_space<vmem>>) attributes {dimension_semantics = [#tpu.dimension_semantics<arbitrary>], iteration_bounds = array<i64: 2>, scalar_prefetch = 0 : i64, scratch_operands = 3 : i64, tpu.core_type = #tpu.core_type<tc>, window_params = [{transform_indices = @transform_0, window_bounds = array<i64: 4, 2, 32>}, {pipeline_mode = #tpu.pipeline_mode<synchronous>, transform_indices = @transform_1, window_bounds = array<i64: 2, 2, 32>}, {pipeline_mode = #tpu.pipeline_mode<synchronous>, transform_indices = @transform_2, window_bounds = array<i64: 2, 8, 32>}, {pipeline_mode = #tpu.pipeline_mode<synchronous>, transform_indices = @transform_3, window_bounds = array<i64: 32, 96>}, {pipeline_mode = #tpu.pipeline_mode<synchronous>, transform_indices = @transform_4, window_bounds = array<i64: 32, 96>}, {pipeline_mode = #tpu.pipeline_mode<synchronous>, transform_indices = @transform_5, window_bounds = array<i64: 32, 96>}, {pipeline_mode = #tpu.pipeline_mode<synchronous>, transform_indices = @transform_6, window_bounds = array<i64: 32, 96>}, {pipeline_mode = #tpu.pipeline_mode<synchronous>, transform_indices = @transform_7, window_bounds = array<i64: 2, 2, 96>}, {pipeline_mode = #tpu.pipeline_mode<synchronous>, transform_indices = @transform_8, window_bounds = array<i64: 3, 32, 32>}, {transform_indices = @transform_9, window_bounds = array<i64: 4, 2, 32>}, {pipeline_mode = #tpu.pipeline_mode<synchronous>, transform_indices = @transform_10, window_bounds = array<i64: 2, 2, 32>}]} {
    %c0_i32 = arith.constant 0 : i32
    %0 = arith.cmpi eq, %arg0, %c0_i32 : i32
    %1 = arith.extui %0 : i1 to i32
    %c0_i32_0 = arith.constant 0 : i32
    %2 = arith.cmpi ne, %1, %c0_i32_0 : i32
    scf.if %2 {
      %c0_139 = arith.constant 0 : index
      %c0_140 = arith.constant 0 : index
      %c0_141 = arith.constant 0 : index
      %399 = vector.load %arg2[%c0_139, %c0_140, %c0_141] : memref<2x2x32xf32, #tpu.memory_space<vmem>>, vector<2x2x32xf32>
      %c0_142 = arith.constant 0 : index
      %c0_143 = arith.constant 0 : index
      %c0_144 = arith.constant 0 : index
      %400 = vector.load %arg12[%c0_142, %c0_143, %c0_144] : memref<2x2x32xf32, #tpu.memory_space<vmem>>, vector<2x2x32xf32>
      tpu.vector_store %arg12[%c0_142, %c0_143, %c0_144], %399 {strides = array<i32>} : memref<2x2x32xf32, #tpu.memory_space<vmem>>, vector<2x2x32xf32>,
    } else {
    }
    %c0 = arith.constant 0 : index
    %c0_1 = arith.constant 0 : index
    %c0_2 = arith.constant 0 : index
    %3 = vector.load %arg3[%c0, %c0_1, %c0_2] : memref<2x8x32xf32, #tpu.memory_space<vmem>>, vector<2x8x32xf32>
    %c0_3 = arith.constant 0 : index
    %c0_4 = arith.constant 0 : index
    %4 = vector.load %arg4[%c0_3, %c0_4] : memref<32x96xf32, #tpu.memory_space<vmem>>, vector<32x96xf32>
    %c0_5 = arith.constant 0 : index
    %c0_6 = arith.constant 0 : index
    %5 = vector.load %arg5[%c0_5, %c0_6] : memref<32x96xf32, #tpu.memory_space<vmem>>, vector<32x96xf32>
    %c0_7 = arith.constant 0 : index
    %c0_8 = arith.constant 0 : index
    %c0_9 = arith.constant 0 : index
    %6 = vector.load %arg8[%c0_7, %c0_8, %c0_9] : memref<2x2x96xf32, #tpu.memory_space<vmem>>, vector<1x2x96xf32>
    %7 = vector.shape_cast %6 : vector<1x2x96xf32> to vector<2x96xf32>
    %8 = vector.extract_strided_slice %7 {offsets = [0, 0], sizes = [1, 96], strides = [1, 1]} : vector<2x96xf32> to vector<1x96xf32>
    %9 = vector.extract_strided_slice %7 {offsets = [1, 0], sizes = [1, 96], strides = [1, 1]} : vector<2x96xf32> to vector<1x96xf32>
    %c0_10 = arith.constant 0 : index
    %c0_11 = arith.constant 0 : index
    %10 = vector.load %arg6[%c0_10, %c0_11] : memref<32x96xf32, #tpu.memory_space<vmem>>, vector<32x96xf32>
    %c0_12 = arith.constant 0 : index
    %c0_13 = arith.constant 0 : index
    %11 = vector.load %arg7[%c0_12, %c0_13] : memref<32x96xf32, #tpu.memory_space<vmem>>, vector<32x96xf32>
    %c1 = arith.constant 1 : index
    %c0_14 = arith.constant 0 : index
    %c0_15 = arith.constant 0 : index
    %12 = vector.load %arg8[%c1, %c0_14, %c0_15] : memref<2x2x96xf32, #tpu.memory_space<vmem>>, vector<1x2x96xf32>
    %13 = vector.shape_cast %12 : vector<1x2x96xf32> to vector<2x96xf32>
    %14 = vector.extract_strided_slice %13 {offsets = [0, 0], sizes = [1, 96], strides = [1, 1]} : vector<2x96xf32> to vector<1x96xf32>
    %15 = vector.extract_strided_slice %13 {offsets = [1, 0], sizes = [1, 96], strides = [1, 1]} : vector<2x96xf32> to vector<1x96xf32>
    %c0_16 = arith.constant 0 : index
    %c0_17 = arith.constant 0 : index
    %c0_18 = arith.constant 0 : index
    %16 = vector.load %arg9[%c0_16, %c0_17, %c0_18] : memref<3x32x32xf32, #tpu.memory_space<vmem>>, vector<1x32x32xf32>
    %17 = vector.shape_cast %16 : vector<1x32x32xf32> to vector<32x32xf32>
    %c1_19 = arith.constant 1 : index
    %c0_20 = arith.constant 0 : index
    %c0_21 = arith.constant 0 : index
    %18 = vector.load %arg9[%c1_19, %c0_20, %c0_21] : memref<3x32x32xf32, #tpu.memory_space<vmem>>, vector<1x32x32xf32>
    %19 = vector.shape_cast %18 : vector<1x32x32xf32> to vector<32x32xf32>
    %c2 = arith.constant 2 : index
    %c0_22 = arith.constant 0 : index
    %c0_23 = arith.constant 0 : index
    %20 = vector.load %arg9[%c2, %c0_22, %c0_23] : memref<3x32x32xf32, #tpu.memory_space<vmem>>, vector<1x32x32xf32>
    %21 = vector.shape_cast %20 : vector<1x32x32xf32> to vector<32x32xf32>
    %c0_24 = arith.constant 0 : index
    %c0_25 = arith.constant 0 : index
    %c0_26 = arith.constant 0 : index
    %22 = vector.load %arg12[%c0_24, %c0_25, %c0_26] : memref<2x2x32xf32, #tpu.memory_space<vmem>>, vector<1x2x32xf32>
    %23 = vector.shape_cast %22 : vector<1x2x32xf32> to vector<2x32xf32>
    %c1_27 = arith.constant 1 : index
    %c0_28 = arith.constant 0 : index
    %c0_29 = arith.constant 0 : index
    %24 = vector.load %arg12[%c1_27, %c0_28, %c0_29] : memref<2x2x32xf32, #tpu.memory_space<vmem>>, vector<1x2x32xf32>
    %25 = vector.shape_cast %24 : vector<1x2x32xf32> to vector<2x32xf32>
    %c0_30 = arith.constant 0 : index
    %c0_31 = arith.constant 0 : index
    %c0_32 = arith.constant 0 : index
    %26 = vector.load %arg1[%c0_30, %c0_31, %c0_32] : memref<4x2x32xf32, #tpu.memory_space<vmem>>, vector<1x2x32xf32>
    %27 = vector.shape_cast %26 : vector<1x2x32xf32> to vector<2x32xf32>
    %cst = arith.constant dense<0.000000e+00> : vector<2x96xf32>
    %28 = tpu.matmul %27, %4, %cst {dimension_numbers = #tpu.dot_dimension_numbers<[1], [0], [0], [1], [0, 0, 1, 1], [], []>} : vector<2x32xf32>, vector<32x96xf32>, vector<2x96xf32> -> vector<2x96xf32>
    %29 = vector.broadcast %8 : vector<1x96xf32> to vector<2x96xf32>
    %30 = arith.addf %28, %29 : vector<2x96xf32>
    %cst_33 = arith.constant dense<0.000000e+00> : vector<2x96xf32>
    %31 = tpu.matmul %23, %5, %cst_33 {dimension_numbers = #tpu.dot_dimension_numbers<[1], [0], [0], [1], [0, 0, 1, 1], [], []>} : vector<2x32xf32>, vector<32x96xf32>, vector<2x96xf32> -> vector<2x96xf32>
    %32 = vector.broadcast %9 : vector<1x96xf32> to vector<2x96xf32>
    %33 = arith.addf %31, %32 : vector<2x96xf32>
    %34 = vector.extract_strided_slice %30 {offsets = [0, 0], sizes = [2, 32], strides = [1, 1]} : vector<2x96xf32> to vector<2x32xf32>
    %35 = vector.extract_strided_slice %33 {offsets = [0, 0], sizes = [2, 32], strides = [1, 1]} : vector<2x96xf32> to vector<2x32xf32>
    %36 = arith.addf %34, %35 : vector<2x32xf32>
    %37 = arith.negf %36 : vector<2x32xf32>
    %38 = math.exp %37 : vector<2x32xf32>
    %cst_34 = arith.constant 1.000000e+00 : f32
    %39 = vector.broadcast %cst_34 : f32 to vector<2x32xf32>
    %40 = arith.addf %39, %38 : vector<2x32xf32>
    %41 = arith.divf %39, %40 : vector<2x32xf32>
    %42 = vector.extract_strided_slice %30 {offsets = [0, 32], sizes = [2, 32], strides = [1, 1]} : vector<2x96xf32> to vector<2x32xf32>
    %43 = vector.extract_strided_slice %33 {offsets = [0, 32], sizes = [2, 32], strides = [1, 1]} : vector<2x96xf32> to vector<2x32xf32>
    %44 = arith.addf %42, %43 : vector<2x32xf32>
    %45 = arith.negf %44 : vector<2x32xf32>
    %46 = math.exp %45 : vector<2x32xf32>
    %cst_35 = arith.constant 1.000000e+00 : f32
    %47 = vector.broadcast %cst_35 : f32 to vector<2x32xf32>
    %48 = arith.addf %47, %46 : vector<2x32xf32>
    %49 = arith.divf %47, %48 : vector<2x32xf32>
    %50 = vector.extract_strided_slice %30 {offsets = [0, 64], sizes = [2, 32], strides = [1, 1]} : vector<2x96xf32> to vector<2x32xf32>
    %51 = vector.extract_strided_slice %33 {offsets = [0, 64], sizes = [2, 32], strides = [1, 1]} : vector<2x96xf32> to vector<2x32xf32>
    %52 = arith.mulf %41, %51 : vector<2x32xf32>
    %53 = arith.addf %50, %52 : vector<2x32xf32>
    %54 = math.tanh %53 : vector<2x32xf32>
    %cst_36 = arith.constant 1.000000e+00 : f32
    %55 = vector.broadcast %cst_36 : f32 to vector<2x32xf32>
    %56 = arith.subf %55, %49 : vector<2x32xf32>
    %57 = arith.mulf %56, %54 : vector<2x32xf32>
    %58 = arith.mulf %49, %23 : vector<2x32xf32>
    %59 = arith.addf %57, %58 : vector<2x32xf32>
    %cst_37 = arith.constant dense<0.000000e+00> : vector<2x96xf32>
    %60 = tpu.matmul %59, %10, %cst_37 {dimension_numbers = #tpu.dot_dimension_numbers<[1], [0], [0], [1], [0, 0, 1, 1], [], []>} : vector<2x32xf32>, vector<32x96xf32>, vector<2x96xf32> -> vector<2x96xf32>
    %61 = vector.broadcast %14 : vector<1x96xf32> to vector<2x96xf32>
    %62 = arith.addf %60, %61 : vector<2x96xf32>
    %cst_38 = arith.constant dense<0.000000e+00> : vector<2x96xf32>
    %63 = tpu.matmul %25, %11, %cst_38 {dimension_numbers = #tpu.dot_dimension_numbers<[1], [0], [0], [1], [0, 0, 1, 1], [], []>} : vector<2x32xf32>, vector<32x96xf32>, vector<2x96xf32> -> vector<2x96xf32>
    %64 = vector.broadcast %15 : vector<1x96xf32> to vector<2x96xf32>
    %65 = arith.addf %63, %64 : vector<2x96xf32>
    %66 = vector.extract_strided_slice %62 {offsets = [0, 0], sizes = [2, 32], strides = [1, 1]} : vector<2x96xf32> to vector<2x32xf32>
    %67 = vector.extract_strided_slice %65 {offsets = [0, 0], sizes = [2, 32], strides = [1, 1]} : vector<2x96xf32> to vector<2x32xf32>
    %68 = arith.addf %66, %67 : vector<2x32xf32>
    %69 = arith.negf %68 : vector<2x32xf32>
    %70 = math.exp %69 : vector<2x32xf32>
    %cst_39 = arith.constant 1.000000e+00 : f32
    %71 = vector.broadcast %cst_39 : f32 to vector<2x32xf32>
    %72 = arith.addf %71, %70 : vector<2x32xf32>
    %73 = arith.divf %71, %72 : vector<2x32xf32>
    %74 = vector.extract_strided_slice %62 {offsets = [0, 32], sizes = [2, 32], strides = [1, 1]} : vector<2x96xf32> to vector<2x32xf32>
    %75 = vector.extract_strided_slice %65 {offsets = [0, 32], sizes = [2, 32], strides = [1, 1]} : vector<2x96xf32> to vector<2x32xf32>
    %76 = arith.addf %74, %75 : vector<2x32xf32>
    %77 = arith.negf %76 : vector<2x32xf32>
    %78 = math.exp %77 : vector<2x32xf32>
    %cst_40 = arith.constant 1.000000e+00 : f32
    %79 = vector.broadcast %cst_40 : f32 to vector<2x32xf32>
    %80 = arith.addf %79, %78 : vector<2x32xf32>
    %81 = arith.divf %79, %80 : vector<2x32xf32>
    %82 = vector.extract_strided_slice %62 {offsets = [0, 64], sizes = [2, 32], strides = [1, 1]} : vector<2x96xf32> to vector<2x32xf32>
    %83 = vector.extract_strided_slice %65 {offsets = [0, 64], sizes = [2, 32], strides = [1, 1]} : vector<2x96xf32> to vector<2x32xf32>
    %84 = arith.mulf %73, %83 : vector<2x32xf32>
    %85 = arith.addf %82, %84 : vector<2x32xf32>
    %86 = math.tanh %85 : vector<2x32xf32>
    %cst_41 = arith.constant 1.000000e+00 : f32
    %87 = vector.broadcast %cst_41 : f32 to vector<2x32xf32>
    %88 = arith.subf %87, %81 : vector<2x32xf32>
    %89 = arith.mulf %88, %86 : vector<2x32xf32>
    %90 = arith.mulf %81, %25 : vector<2x32xf32>
    %91 = arith.addf %89, %90 : vector<2x32xf32>
    %c0_42 = arith.constant 0 : index
    %c0_43 = arith.constant 0 : index
    %c0_44 = arith.constant 0 : index
    %92 = vector.load %arg13[%c0_42, %c0_43, %c0_44] : memref<4x2x32xf32, #tpu.memory_space<vmem>>, vector<1x2x32xf32>
    %93 = vector.shape_cast %92 : vector<1x2x32xf32> to vector<2x32xf32>
    %94 = vector.shape_cast %91 : vector<2x32xf32> to vector<1x2x32xf32>
    tpu.vector_store %arg13[%c0_42, %c0_43, %c0_44], %94 {strides = array<i32>} : memref<4x2x32xf32, #tpu.memory_space<vmem>>, vector<1x2x32xf32>,
    %c1_45 = arith.constant 1 : index
    %c0_46 = arith.constant 0 : index
    %c0_47 = arith.constant 0 : index
    %95 = vector.load %arg1[%c1_45, %c0_46, %c0_47] : memref<4x2x32xf32, #tpu.memory_space<vmem>>, vector<1x2x32xf32>
    %96 = vector.shape_cast %95 : vector<1x2x32xf32> to vector<2x32xf32>
    %cst_48 = arith.constant dense<0.000000e+00> : vector<2x96xf32>
    %97 = tpu.matmul %96, %4, %cst_48 {dimension_numbers = #tpu.dot_dimension_numbers<[1], [0], [0], [1], [0, 0, 1, 1], [], []>} : vector<2x32xf32>, vector<32x96xf32>, vector<2x96xf32> -> vector<2x96xf32>
    %98 = vector.broadcast %8 : vector<1x96xf32> to vector<2x96xf32>
    %99 = arith.addf %97, %98 : vector<2x96xf32>
    %cst_49 = arith.constant dense<0.000000e+00> : vector<2x96xf32>
    %100 = tpu.matmul %59, %5, %cst_49 {dimension_numbers = #tpu.dot_dimension_numbers<[1], [0], [0], [1], [0, 0, 1, 1], [], []>} : vector<2x32xf32>, vector<32x96xf32>, vector<2x96xf32> -> vector<2x96xf32>
    %101 = vector.broadcast %9 : vector<1x96xf32> to vector<2x96xf32>
    %102 = arith.addf %100, %101 : vector<2x96xf32>
    %103 = vector.extract_strided_slice %99 {offsets = [0, 0], sizes = [2, 32], strides = [1, 1]} : vector<2x96xf32> to vector<2x32xf32>
    %104 = vector.extract_strided_slice %102 {offsets = [0, 0], sizes = [2, 32], strides = [1, 1]} : vector<2x96xf32> to vector<2x32xf32>
    %105 = arith.addf %103, %104 : vector<2x32xf32>
    %106 = arith.negf %105 : vector<2x32xf32>
    %107 = math.exp %106 : vector<2x32xf32>
    %cst_50 = arith.constant 1.000000e+00 : f32
    %108 = vector.broadcast %cst_50 : f32 to vector<2x32xf32>
    %109 = arith.addf %108, %107 : vector<2x32xf32>
    %110 = arith.divf %108, %109 : vector<2x32xf32>
    %111 = vector.extract_strided_slice %99 {offsets = [0, 32], sizes = [2, 32], strides = [1, 1]} : vector<2x96xf32> to vector<2x32xf32>
    %112 = vector.extract_strided_slice %102 {offsets = [0, 32], sizes = [2, 32], strides = [1, 1]} : vector<2x96xf32> to vector<2x32xf32>
    %113 = arith.addf %111, %112 : vector<2x32xf32>
    %114 = arith.negf %113 : vector<2x32xf32>
    %115 = math.exp %114 : vector<2x32xf32>
    %cst_51 = arith.constant 1.000000e+00 : f32
    %116 = vector.broadcast %cst_51 : f32 to vector<2x32xf32>
    %117 = arith.addf %116, %115 : vector<2x32xf32>
    %118 = arith.divf %116, %117 : vector<2x32xf32>
    %119 = vector.extract_strided_slice %99 {offsets = [0, 64], sizes = [2, 32], strides = [1, 1]} : vector<2x96xf32> to vector<2x32xf32>
    %120 = vector.extract_strided_slice %102 {offsets = [0, 64], sizes = [2, 32], strides = [1, 1]} : vector<2x96xf32> to vector<2x32xf32>
    %121 = arith.mulf %110, %120 : vector<2x32xf32>
    %122 = arith.addf %119, %121 : vector<2x32xf32>
    %123 = math.tanh %122 : vector<2x32xf32>
    %cst_52 = arith.constant 1.000000e+00 : f32
    %124 = vector.broadcast %cst_52 : f32 to vector<2x32xf32>
    %125 = arith.subf %124, %118 : vector<2x32xf32>
    %126 = arith.mulf %125, %123 : vector<2x32xf32>
    %127 = arith.mulf %118, %59 : vector<2x32xf32>
    %128 = arith.addf %126, %127 : vector<2x32xf32>
    %cst_53 = arith.constant dense<0.000000e+00> : vector<2x96xf32>
    %129 = tpu.matmul %128, %10, %cst_53 {dimension_numbers = #tpu.dot_dimension_numbers<[1], [0], [0], [1], [0, 0, 1, 1], [], []>} : vector<2x32xf32>, vector<32x96xf32>, vector<2x96xf32> -> vector<2x96xf32>
    %130 = vector.broadcast %14 : vector<1x96xf32> to vector<2x96xf32>
    %131 = arith.addf %129, %130 : vector<2x96xf32>
    %cst_54 = arith.constant dense<0.000000e+00> : vector<2x96xf32>
    %132 = tpu.matmul %91, %11, %cst_54 {dimension_numbers = #tpu.dot_dimension_numbers<[1], [0], [0], [1], [0, 0, 1, 1], [], []>} : vector<2x32xf32>, vector<32x96xf32>, vector<2x96xf32> -> vector<2x96xf32>
    %133 = vector.broadcast %15 : vector<1x96xf32> to vector<2x96xf32>
    %134 = arith.addf %132, %133 : vector<2x96xf32>
    %135 = vector.extract_strided_slice %131 {offsets = [0, 0], sizes = [2, 32], strides = [1, 1]} : vector<2x96xf32> to vector<2x32xf32>
    %136 = vector.extract_strided_slice %134 {offsets = [0, 0], sizes = [2, 32], strides = [1, 1]} : vector<2x96xf32> to vector<2x32xf32>
    %137 = arith.addf %135, %136 : vector<2x32xf32>
    %138 = arith.negf %137 : vector<2x32xf32>
    %139 = math.exp %138 : vector<2x32xf32>
    %cst_55 = arith.constant 1.000000e+00 : f32
    %140 = vector.broadcast %cst_55 : f32 to vector<2x32xf32>
    %141 = arith.addf %140, %139 : vector<2x32xf32>
    %142 = arith.divf %140, %141 : vector<2x32xf32>
    %143 = vector.extract_strided_slice %131 {offsets = [0, 32], sizes = [2, 32], strides = [1, 1]} : vector<2x96xf32> to vector<2x32xf32>
    %144 = vector.extract_strided_slice %134 {offsets = [0, 32], sizes = [2, 32], strides = [1, 1]} : vector<2x96xf32> to vector<2x32xf32>
    %145 = arith.addf %143, %144 : vector<2x32xf32>
    %146 = arith.negf %145 : vector<2x32xf32>
    %147 = math.exp %146 : vector<2x32xf32>
    %cst_56 = arith.constant 1.000000e+00 : f32
    %148 = vector.broadcast %cst_56 : f32 to vector<2x32xf32>
    %149 = arith.addf %148, %147 : vector<2x32xf32>
    %150 = arith.divf %148, %149 : vector<2x32xf32>
    %151 = vector.extract_strided_slice %131 {offsets = [0, 64], sizes = [2, 32], strides = [1, 1]} : vector<2x96xf32> to vector<2x32xf32>
    %152 = vector.extract_strided_slice %134 {offsets = [0, 64], sizes = [2, 32], strides = [1, 1]} : vector<2x96xf32> to vector<2x32xf32>
    %153 = arith.mulf %142, %152 : vector<2x32xf32>
    %154 = arith.addf %151, %153 : vector<2x32xf32>
    %155 = math.tanh %154 : vector<2x32xf32>
    %cst_57 = arith.constant 1.000000e+00 : f32
    %156 = vector.broadcast %cst_57 : f32 to vector<2x32xf32>
    %157 = arith.subf %156, %150 : vector<2x32xf32>
    %158 = arith.mulf %157, %155 : vector<2x32xf32>
    %159 = arith.mulf %150, %91 : vector<2x32xf32>
    %160 = arith.addf %158, %159 : vector<2x32xf32>
    %c1_58 = arith.constant 1 : index
    %c0_59 = arith.constant 0 : index
    %c0_60 = arith.constant 0 : index
    %161 = vector.load %arg13[%c1_58, %c0_59, %c0_60] : memref<4x2x32xf32, #tpu.memory_space<vmem>>, vector<1x2x32xf32>
    %162 = vector.shape_cast %161 : vector<1x2x32xf32> to vector<2x32xf32>
    %163 = vector.shape_cast %160 : vector<2x32xf32> to vector<1x2x32xf32>
    tpu.vector_store %arg13[%c1_58, %c0_59, %c0_60], %163 {strides = array<i32>} : memref<4x2x32xf32, #tpu.memory_space<vmem>>, vector<1x2x32xf32>,
    %c2_61 = arith.constant 2 : index
    %c0_62 = arith.constant 0 : index
    %c0_63 = arith.constant 0 : index
    %164 = vector.load %arg1[%c2_61, %c0_62, %c0_63] : memref<4x2x32xf32, #tpu.memory_space<vmem>>, vector<1x2x32xf32>
    %165 = vector.shape_cast %164 : vector<1x2x32xf32> to vector<2x32xf32>
    %cst_64 = arith.constant dense<0.000000e+00> : vector<2x96xf32>
    %166 = tpu.matmul %165, %4, %cst_64 {dimension_numbers = #tpu.dot_dimension_numbers<[1], [0], [0], [1], [0, 0, 1, 1], [], []>} : vector<2x32xf32>, vector<32x96xf32>, vector<2x96xf32> -> vector<2x96xf32>
    %167 = vector.broadcast %8 : vector<1x96xf32> to vector<2x96xf32>
    %168 = arith.addf %166, %167 : vector<2x96xf32>
    %cst_65 = arith.constant dense<0.000000e+00> : vector<2x96xf32>
    %169 = tpu.matmul %128, %5, %cst_65 {dimension_numbers = #tpu.dot_dimension_numbers<[1], [0], [0], [1], [0, 0, 1, 1], [], []>} : vector<2x32xf32>, vector<32x96xf32>, vector<2x96xf32> -> vector<2x96xf32>
    %170 = vector.broadcast %9 : vector<1x96xf32> to vector<2x96xf32>
    %171 = arith.addf %169, %170 : vector<2x96xf32>
    %172 = vector.extract_strided_slice %168 {offsets = [0, 0], sizes = [2, 32], strides = [1, 1]} : vector<2x96xf32> to vector<2x32xf32>
    %173 = vector.extract_strided_slice %171 {offsets = [0, 0], sizes = [2, 32], strides = [1, 1]} : vector<2x96xf32> to vector<2x32xf32>
    %174 = arith.addf %172, %173 : vector<2x32xf32>
    %175 = arith.negf %174 : vector<2x32xf32>
    %176 = math.exp %175 : vector<2x32xf32>
    %cst_66 = arith.constant 1.000000e+00 : f32
    %177 = vector.broadcast %cst_66 : f32 to vector<2x32xf32>
    %178 = arith.addf %177, %176 : vector<2x32xf32>
    %179 = arith.divf %177, %178 : vector<2x32xf32>
    %180 = vector.extract_strided_slice %168 {offsets = [0, 32], sizes = [2, 32], strides = [1, 1]} : vector<2x96xf32> to vector<2x32xf32>
    %181 = vector.extract_strided_slice %171 {offsets = [0, 32], sizes = [2, 32], strides = [1, 1]} : vector<2x96xf32> to vector<2x32xf32>
    %182 = arith.addf %180, %181 : vector<2x32xf32>
    %183 = arith.negf %182 : vector<2x32xf32>
    %184 = math.exp %183 : vector<2x32xf32>
    %cst_67 = arith.constant 1.000000e+00 : f32
    %185 = vector.broadcast %cst_67 : f32 to vector<2x32xf32>
    %186 = arith.addf %185, %184 : vector<2x32xf32>
    %187 = arith.divf %185, %186 : vector<2x32xf32>
    %188 = vector.extract_strided_slice %168 {offsets = [0, 64], sizes = [2, 32], strides = [1, 1]} : vector<2x96xf32> to vector<2x32xf32>
    %189 = vector.extract_strided_slice %171 {offsets = [0, 64], sizes = [2, 32], strides = [1, 1]} : vector<2x96xf32> to vector<2x32xf32>
    %190 = arith.mulf %179, %189 : vector<2x32xf32>
    %191 = arith.addf %188, %190 : vector<2x32xf32>
    %192 = math.tanh %191 : vector<2x32xf32>
    %cst_68 = arith.constant 1.000000e+00 : f32
    %193 = vector.broadcast %cst_68 : f32 to vector<2x32xf32>
    %194 = arith.subf %193, %187 : vector<2x32xf32>
    %195 = arith.mulf %194, %192 : vector<2x32xf32>
    %196 = arith.mulf %187, %128 : vector<2x32xf32>
    %197 = arith.addf %195, %196 : vector<2x32xf32>
    %cst_69 = arith.constant dense<0.000000e+00> : vector<2x96xf32>
    %198 = tpu.matmul %197, %10, %cst_69 {dimension_numbers = #tpu.dot_dimension_numbers<[1], [0], [0], [1], [0, 0, 1, 1], [], []>} : vector<2x32xf32>, vector<32x96xf32>, vector<2x96xf32> -> vector<2x96xf32>
    %199 = vector.broadcast %14 : vector<1x96xf32> to vector<2x96xf32>
    %200 = arith.addf %198, %199 : vector<2x96xf32>
    %cst_70 = arith.constant dense<0.000000e+00> : vector<2x96xf32>
    %201 = tpu.matmul %160, %11, %cst_70 {dimension_numbers = #tpu.dot_dimension_numbers<[1], [0], [0], [1], [0, 0, 1, 1], [], []>} : vector<2x32xf32>, vector<32x96xf32>, vector<2x96xf32> -> vector<2x96xf32>
    %202 = vector.broadcast %15 : vector<1x96xf32> to vector<2x96xf32>
    %203 = arith.addf %201, %202 : vector<2x96xf32>
    %204 = vector.extract_strided_slice %200 {offsets = [0, 0], sizes = [2, 32], strides = [1, 1]} : vector<2x96xf32> to vector<2x32xf32>
    %205 = vector.extract_strided_slice %203 {offsets = [0, 0], sizes = [2, 32], strides = [1, 1]} : vector<2x96xf32> to vector<2x32xf32>
    %206 = arith.addf %204, %205 : vector<2x32xf32>
    %207 = arith.negf %206 : vector<2x32xf32>
    %208 = math.exp %207 : vector<2x32xf32>
    %cst_71 = arith.constant 1.000000e+00 : f32
    %209 = vector.broadcast %cst_71 : f32 to vector<2x32xf32>
    %210 = arith.addf %209, %208 : vector<2x32xf32>
    %211 = arith.divf %209, %210 : vector<2x32xf32>
    %212 = vector.extract_strided_slice %200 {offsets = [0, 32], sizes = [2, 32], strides = [1, 1]} : vector<2x96xf32> to vector<2x32xf32>
    %213 = vector.extract_strided_slice %203 {offsets = [0, 32], sizes = [2, 32], strides = [1, 1]} : vector<2x96xf32> to vector<2x32xf32>
    %214 = arith.addf %212, %213 : vector<2x32xf32>
    %215 = arith.negf %214 : vector<2x32xf32>
    %216 = math.exp %215 : vector<2x32xf32>
    %cst_72 = arith.constant 1.000000e+00 : f32
    %217 = vector.broadcast %cst_72 : f32 to vector<2x32xf32>
    %218 = arith.addf %217, %216 : vector<2x32xf32>
    %219 = arith.divf %217, %218 : vector<2x32xf32>
    %220 = vector.extract_strided_slice %200 {offsets = [0, 64], sizes = [2, 32], strides = [1, 1]} : vector<2x96xf32> to vector<2x32xf32>
    %221 = vector.extract_strided_slice %203 {offsets = [0, 64], sizes = [2, 32], strides = [1, 1]} : vector<2x96xf32> to vector<2x32xf32>
    %222 = arith.mulf %211, %221 : vector<2x32xf32>
    %223 = arith.addf %220, %222 : vector<2x32xf32>
    %224 = math.tanh %223 : vector<2x32xf32>
    %cst_73 = arith.constant 1.000000e+00 : f32
    %225 = vector.broadcast %cst_73 : f32 to vector<2x32xf32>
    %226 = arith.subf %225, %219 : vector<2x32xf32>
    %227 = arith.mulf %226, %224 : vector<2x32xf32>
    %228 = arith.mulf %219, %160 : vector<2x32xf32>
    %229 = arith.addf %227, %228 : vector<2x32xf32>
    %c2_74 = arith.constant 2 : index
    %c0_75 = arith.constant 0 : index
    %c0_76 = arith.constant 0 : index
    %230 = vector.load %arg13[%c2_74, %c0_75, %c0_76] : memref<4x2x32xf32, #tpu.memory_space<vmem>>, vector<1x2x32xf32>
    %231 = vector.shape_cast %230 : vector<1x2x32xf32> to vector<2x32xf32>
    %232 = vector.shape_cast %229 : vector<2x32xf32> to vector<1x2x32xf32>
    tpu.vector_store %arg13[%c2_74, %c0_75, %c0_76], %232 {strides = array<i32>} : memref<4x2x32xf32, #tpu.memory_space<vmem>>, vector<1x2x32xf32>,
    %c3 = arith.constant 3 : index
    %c0_77 = arith.constant 0 : index
    %c0_78 = arith.constant 0 : index
    %233 = vector.load %arg1[%c3, %c0_77, %c0_78] : memref<4x2x32xf32, #tpu.memory_space<vmem>>, vector<1x2x32xf32>
    %234 = vector.shape_cast %233 : vector<1x2x32xf32> to vector<2x32xf32>
    %cst_79 = arith.constant dense<0.000000e+00> : vector<2x96xf32>
    %235 = tpu.matmul %234, %4, %cst_79 {dimension_numbers = #tpu.dot_dimension_numbers<[1], [0], [0], [1], [0, 0, 1, 1], [], []>} : vector<2x32xf32>, vector<32x96xf32>, vector<2x96xf32> -> vector<2x96xf32>
    %236 = vector.broadcast %8 : vector<1x96xf32> to vector<2x96xf32>
    %237 = arith.addf %235, %236 : vector<2x96xf32>
    %cst_80 = arith.constant dense<0.000000e+00> : vector<2x96xf32>
    %238 = tpu.matmul %197, %5, %cst_80 {dimension_numbers = #tpu.dot_dimension_numbers<[1], [0], [0], [1], [0, 0, 1, 1], [], []>} : vector<2x32xf32>, vector<32x96xf32>, vector<2x96xf32> -> vector<2x96xf32>
    %239 = vector.broadcast %9 : vector<1x96xf32> to vector<2x96xf32>
    %240 = arith.addf %238, %239 : vector<2x96xf32>
    %241 = vector.extract_strided_slice %237 {offsets = [0, 0], sizes = [2, 32], strides = [1, 1]} : vector<2x96xf32> to vector<2x32xf32>
    %242 = vector.extract_strided_slice %240 {offsets = [0, 0], sizes = [2, 32], strides = [1, 1]} : vector<2x96xf32> to vector<2x32xf32>
    %243 = arith.addf %241, %242 : vector<2x32xf32>
    %244 = arith.negf %243 : vector<2x32xf32>
    %245 = math.exp %244 : vector<2x32xf32>
    %cst_81 = arith.constant 1.000000e+00 : f32
    %246 = vector.broadcast %cst_81 : f32 to vector<2x32xf32>
    %247 = arith.addf %246, %245 : vector<2x32xf32>
    %248 = arith.divf %246, %247 : vector<2x32xf32>
    %249 = vector.extract_strided_slice %237 {offsets = [0, 32], sizes = [2, 32], strides = [1, 1]} : vector<2x96xf32> to vector<2x32xf32>
    %250 = vector.extract_strided_slice %240 {offsets = [0, 32], sizes = [2, 32], strides = [1, 1]} : vector<2x96xf32> to vector<2x32xf32>
    %251 = arith.addf %249, %250 : vector<2x32xf32>
    %252 = arith.negf %251 : vector<2x32xf32>
    %253 = math.exp %252 : vector<2x32xf32>
    %cst_82 = arith.constant 1.000000e+00 : f32
    %254 = vector.broadcast %cst_82 : f32 to vector<2x32xf32>
    %255 = arith.addf %254, %253 : vector<2x32xf32>
    %256 = arith.divf %254, %255 : vector<2x32xf32>
    %257 = vector.extract_strided_slice %237 {offsets = [0, 64], sizes = [2, 32], strides = [1, 1]} : vector<2x96xf32> to vector<2x32xf32>
    %258 = vector.extract_strided_slice %240 {offsets = [0, 64], sizes = [2, 32], strides = [1, 1]} : vector<2x96xf32> to vector<2x32xf32>
    %259 = arith.mulf %248, %258 : vector<2x32xf32>
    %260 = arith.addf %257, %259 : vector<2x32xf32>
    %261 = math.tanh %260 : vector<2x32xf32>
    %cst_83 = arith.constant 1.000000e+00 : f32
    %262 = vector.broadcast %cst_83 : f32 to vector<2x32xf32>
    %263 = arith.subf %262, %256 : vector<2x32xf32>
    %264 = arith.mulf %263, %261 : vector<2x32xf32>
    %265 = arith.mulf %256, %197 : vector<2x32xf32>
    %266 = arith.addf %264, %265 : vector<2x32xf32>
    %cst_84 = arith.constant dense<0.000000e+00> : vector<2x96xf32>
    %267 = tpu.matmul %266, %10, %cst_84 {dimension_numbers = #tpu.dot_dimension_numbers<[1], [0], [0], [1], [0, 0, 1, 1], [], []>} : vector<2x32xf32>, vector<32x96xf32>, vector<2x96xf32> -> vector<2x96xf32>
    %268 = vector.broadcast %14 : vector<1x96xf32> to vector<2x96xf32>
    %269 = arith.addf %267, %268 : vector<2x96xf32>
    %cst_85 = arith.constant dense<0.000000e+00> : vector<2x96xf32>
    %270 = tpu.matmul %229, %11, %cst_85 {dimension_numbers = #tpu.dot_dimension_numbers<[1], [0], [0], [1], [0, 0, 1, 1], [], []>} : vector<2x32xf32>, vector<32x96xf32>, vector<2x96xf32> -> vector<2x96xf32>
    %271 = vector.broadcast %15 : vector<1x96xf32> to vector<2x96xf32>
    %272 = arith.addf %270, %271 : vector<2x96xf32>
    %273 = vector.extract_strided_slice %269 {offsets = [0, 0], sizes = [2, 32], strides = [1, 1]} : vector<2x96xf32> to vector<2x32xf32>
    %274 = vector.extract_strided_slice %272 {offsets = [0, 0], sizes = [2, 32], strides = [1, 1]} : vector<2x96xf32> to vector<2x32xf32>
    %275 = arith.addf %273, %274 : vector<2x32xf32>
    %276 = arith.negf %275 : vector<2x32xf32>
    %277 = math.exp %276 : vector<2x32xf32>
    %cst_86 = arith.constant 1.000000e+00 : f32
    %278 = vector.broadcast %cst_86 : f32 to vector<2x32xf32>
    %279 = arith.addf %278, %277 : vector<2x32xf32>
    %280 = arith.divf %278, %279 : vector<2x32xf32>
    %281 = vector.extract_strided_slice %269 {offsets = [0, 32], sizes = [2, 32], strides = [1, 1]} : vector<2x96xf32> to vector<2x32xf32>
    %282 = vector.extract_strided_slice %272 {offsets = [0, 32], sizes = [2, 32], strides = [1, 1]} : vector<2x96xf32> to vector<2x32xf32>
    %283 = arith.addf %281, %282 : vector<2x32xf32>
    %284 = arith.negf %283 : vector<2x32xf32>
    %285 = math.exp %284 : vector<2x32xf32>
    %cst_87 = arith.constant 1.000000e+00 : f32
    %286 = vector.broadcast %cst_87 : f32 to vector<2x32xf32>
    %287 = arith.addf %286, %285 : vector<2x32xf32>
    %288 = arith.divf %286, %287 : vector<2x32xf32>
    %289 = vector.extract_strided_slice %269 {offsets = [0, 64], sizes = [2, 32], strides = [1, 1]} : vector<2x96xf32> to vector<2x32xf32>
    %290 = vector.extract_strided_slice %272 {offsets = [0, 64], sizes = [2, 32], strides = [1, 1]} : vector<2x96xf32> to vector<2x32xf32>
    %291 = arith.mulf %280, %290 : vector<2x32xf32>
    %292 = arith.addf %289, %291 : vector<2x32xf32>
    %293 = math.tanh %292 : vector<2x32xf32>
    %cst_88 = arith.constant 1.000000e+00 : f32
    %294 = vector.broadcast %cst_88 : f32 to vector<2x32xf32>
    %295 = arith.subf %294, %288 : vector<2x32xf32>
    %296 = arith.mulf %295, %293 : vector<2x32xf32>
    %297 = arith.mulf %288, %229 : vector<2x32xf32>
    %298 = arith.addf %296, %297 : vector<2x32xf32>
    %c3_89 = arith.constant 3 : index
    %c0_90 = arith.constant 0 : index
    %c0_91 = arith.constant 0 : index
    %299 = vector.load %arg13[%c3_89, %c0_90, %c0_91] : memref<4x2x32xf32, #tpu.memory_space<vmem>>, vector<1x2x32xf32>
    %300 = vector.shape_cast %299 : vector<1x2x32xf32> to vector<2x32xf32>
    %301 = vector.shape_cast %298 : vector<2x32xf32> to vector<1x2x32xf32>
    tpu.vector_store %arg13[%c3_89, %c0_90, %c0_91], %301 {strides = array<i32>} : memref<4x2x32xf32, #tpu.memory_space<vmem>>, vector<1x2x32xf32>,
    %c0_92 = arith.constant 0 : index
    %c0_93 = arith.constant 0 : index
    %c0_94 = arith.constant 0 : index
    %302 = vector.load %arg12[%c0_92, %c0_93, %c0_94] : memref<2x2x32xf32, #tpu.memory_space<vmem>>, vector<1x2x32xf32>
    %303 = vector.shape_cast %302 : vector<1x2x32xf32> to vector<2x32xf32>
    %304 = vector.shape_cast %266 : vector<2x32xf32> to vector<1x2x32xf32>
    tpu.vector_store %arg12[%c0_92, %c0_93, %c0_94], %304 {strides = array<i32>} : memref<2x2x32xf32, #tpu.memory_space<vmem>>, vector<1x2x32xf32>,
    %c1_95 = arith.constant 1 : index
    %c0_96 = arith.constant 0 : index
    %c0_97 = arith.constant 0 : index
    %305 = vector.load %arg12[%c1_95, %c0_96, %c0_97] : memref<2x2x32xf32, #tpu.memory_space<vmem>>, vector<1x2x32xf32>
    %306 = vector.shape_cast %305 : vector<1x2x32xf32> to vector<2x32xf32>
    %307 = vector.shape_cast %298 : vector<2x32xf32> to vector<1x2x32xf32>
    tpu.vector_store %arg12[%c1_95, %c0_96, %c0_97], %307 {strides = array<i32>} : memref<2x2x32xf32, #tpu.memory_space<vmem>>, vector<1x2x32xf32>,
    %c1_i32 = arith.constant 1 : i32
    %308 = arith.cmpi eq, %arg0, %c1_i32 : i32
    %309 = arith.extui %308 : i1 to i32
    %c0_i32_98 = arith.constant 0 : i32
    %310 = arith.cmpi ne, %309, %c0_i32_98 : i32
    scf.if %310 {
      %c0_139 = arith.constant 0 : index
      %c0_140 = arith.constant 0 : index
      %c0_141 = arith.constant 0 : index
      %399 = vector.load %arg12[%c0_139, %c0_140, %c0_141] : memref<2x2x32xf32, #tpu.memory_space<vmem>>, vector<2x2x32xf32>
      %c0_142 = arith.constant 0 : index
      %c0_143 = arith.constant 0 : index
      %c0_144 = arith.constant 0 : index
      %400 = vector.load %arg11[%c0_142, %c0_143, %c0_144] : memref<2x2x32xf32, #tpu.memory_space<vmem>>, vector<2x2x32xf32>
      tpu.vector_store %arg11[%c0_142, %c0_143, %c0_144], %399 {strides = array<i32>} : memref<2x2x32xf32, #tpu.memory_space<vmem>>, vector<2x2x32xf32>,
    } else {
    }
    %c0_99 = arith.constant 0 : index
    %c0_100 = arith.constant 0 : index
    %c0_101 = arith.constant 0 : index
    %311 = vector.load %arg13[%c0_99, %c0_100, %c0_101] : memref<4x2x32xf32, #tpu.memory_space<vmem>>, vector<4x2x32xf32>
    %312 = vector.shape_cast %311 : vector<4x2x32xf32> to vector<8x32xf32>
    %cst_102 = arith.constant dense<0.000000e+00> : vector<8x32xf32>
    %313 = tpu.matmul %312, %17, %cst_102 {dimension_numbers = #tpu.dot_dimension_numbers<[1], [0], [0], [1], [0, 0, 1, 1], [], []>} : vector<8x32xf32>, vector<32x32xf32>, vector<8x32xf32> -> vector<8x32xf32>
    %314 = vector.shape_cast %313 : vector<8x32xf32> to vector<4x2x32xf32>
    %315 = vector.extract_strided_slice %314 {offsets = [0, 0, 0], sizes = [1, 2, 32], strides = [1, 1, 1]} : vector<4x2x32xf32> to vector<1x2x32xf32>
    %316 = vector.shape_cast %315 : vector<1x2x32xf32> to vector<2x32xf32>
    %317 = vector.shape_cast %316 : vector<2x32xf32> to vector<2x1x32xf32>
    "tpu.trace_start"() <{level = 10 : i32, message = "bqh,bsh->bqs"}> : () -> ()
    %cst_103 = arith.constant dense<0.000000e+00> : vector<2x1x8xf32>
    %318 = tpu.matmul %317, %3, %cst_103 {dimension_numbers = #tpu.dot_dimension_numbers<[2], [2], [1], [1], [0, 0, 0, 1, 1, 1], [0], [0]>} : vector<2x1x32xf32>, vector<2x8x32xf32>, vector<2x1x8xf32> -> vector<2x1x8xf32>
    "tpu.trace_stop"() : () -> ()
    %cst_104 = arith.constant dense<0xFF800000> : vector<2x1xf32>
    %319 = vector.multi_reduction <maximumf>, %318, %cst_104 [2] : vector<2x1x8xf32> to vector<2x1xf32>
    %320 = vector.shape_cast %319 : vector<2x1xf32> to vector<2x1x1xf32>
    %321 = vector.broadcast %320 : vector<2x1x1xf32> to vector<2x1x8xf32>
    %322 = arith.subf %318, %321 : vector<2x1x8xf32>
    %323 = math.exp %322 : vector<2x1x8xf32>
    %cst_105 = arith.constant dense<0.000000e+00> : vector<2x1xf32>
    %324 = vector.multi_reduction <add>, %323, %cst_105 [2] : vector<2x1x8xf32> to vector<2x1xf32>
    %325 = vector.shape_cast %324 : vector<2x1xf32> to vector<2x1x1xf32>
    %326 = tpu.reciprocal %325 {approx = true} : vector<2x1x1xf32> -> vector<2x1x1xf32>
    %327 = vector.broadcast %326 : vector<2x1x1xf32> to vector<2x1x8xf32>
    %328 = arith.mulf %323, %327 : vector<2x1x8xf32>
    "tpu.trace_start"() <{level = 10 : i32, message = "bqs,bsh->bqh"}> : () -> ()
    %cst_106 = arith.constant dense<0.000000e+00> : vector<2x1x32xf32>
    %329 = tpu.matmul %328, %3, %cst_106 {dimension_numbers = #tpu.dot_dimension_numbers<[2], [1], [1], [2], [0, 0, 0, 1, 1, 2], [0], [0]>} : vector<2x1x8xf32>, vector<2x8x32xf32>, vector<2x1x32xf32> -> vector<2x1x32xf32>
    "tpu.trace_stop"() : () -> ()
    %330 = vector.shape_cast %329 : vector<2x1x32xf32> to vector<2x32xf32>
    %c0_107 = arith.constant 0 : index
    %c0_108 = arith.constant 0 : index
    %c0_109 = arith.constant 0 : index
    %331 = vector.load %arg14[%c0_107, %c0_108, %c0_109] : memref<4x2x32xf32, #tpu.memory_space<vmem>>, vector<1x2x32xf32>
    %332 = vector.shape_cast %331 : vector<1x2x32xf32> to vector<2x32xf32>
    %333 = vector.shape_cast %330 : vector<2x32xf32> to vector<1x2x32xf32>
    tpu.vector_store %arg14[%c0_107, %c0_108, %c0_109], %333 {strides = array<i32>} : memref<4x2x32xf32, #tpu.memory_space<vmem>>, vector<1x2x32xf32>,
    %334 = vector.extract_strided_slice %314 {offsets = [1, 0, 0], sizes = [1, 2, 32], strides = [1, 1, 1]} : vector<4x2x32xf32> to vector<1x2x32xf32>
    %335 = vector.shape_cast %334 : vector<1x2x32xf32> to vector<2x32xf32>
    %336 = vector.shape_cast %335 : vector<2x32xf32> to vector<2x1x32xf32>
    "tpu.trace_start"() <{level = 10 : i32, message = "bqh,bsh->bqs"}> : () -> ()
    %cst_110 = arith.constant dense<0.000000e+00> : vector<2x1x8xf32>
    %337 = tpu.matmul %336, %3, %cst_110 {dimension_numbers = #tpu.dot_dimension_numbers<[2], [2], [1], [1], [0, 0, 0, 1, 1, 1], [0], [0]>} : vector<2x1x32xf32>, vector<2x8x32xf32>, vector<2x1x8xf32> -> vector<2x1x8xf32>
    "tpu.trace_stop"() : () -> ()
    %cst_111 = arith.constant dense<0xFF800000> : vector<2x1xf32>
    %338 = vector.multi_reduction <maximumf>, %337, %cst_111 [2] : vector<2x1x8xf32> to vector<2x1xf32>
    %339 = vector.shape_cast %338 : vector<2x1xf32> to vector<2x1x1xf32>
    %340 = vector.broadcast %339 : vector<2x1x1xf32> to vector<2x1x8xf32>
    %341 = arith.subf %337, %340 : vector<2x1x8xf32>
    %342 = math.exp %341 : vector<2x1x8xf32>
    %cst_112 = arith.constant dense<0.000000e+00> : vector<2x1xf32>
    %343 = vector.multi_reduction <add>, %342, %cst_112 [2] : vector<2x1x8xf32> to vector<2x1xf32>
    %344 = vector.shape_cast %343 : vector<2x1xf32> to vector<2x1x1xf32>
    %345 = tpu.reciprocal %344 {approx = true} : vector<2x1x1xf32> -> vector<2x1x1xf32>
    %346 = vector.broadcast %345 : vector<2x1x1xf32> to vector<2x1x8xf32>
    %347 = arith.mulf %342, %346 : vector<2x1x8xf32>
    "tpu.trace_start"() <{level = 10 : i32, message = "bqs,bsh->bqh"}> : () -> ()
    %cst_113 = arith.constant dense<0.000000e+00> : vector<2x1x32xf32>
    %348 = tpu.matmul %347, %3, %cst_113 {dimension_numbers = #tpu.dot_dimension_numbers<[2], [1], [1], [2], [0, 0, 0, 1, 1, 2], [0], [0]>} : vector<2x1x8xf32>, vector<2x8x32xf32>, vector<2x1x32xf32> -> vector<2x1x32xf32>
    "tpu.trace_stop"() : () -> ()
    %349 = vector.shape_cast %348 : vector<2x1x32xf32> to vector<2x32xf32>
    %c1_114 = arith.constant 1 : index
    %c0_115 = arith.constant 0 : index
    %c0_116 = arith.constant 0 : index
    %350 = vector.load %arg14[%c1_114, %c0_115, %c0_116] : memref<4x2x32xf32, #tpu.memory_space<vmem>>, vector<1x2x32xf32>
    %351 = vector.shape_cast %350 : vector<1x2x32xf32> to vector<2x32xf32>
    %352 = vector.shape_cast %349 : vector<2x32xf32> to vector<1x2x32xf32>
    tpu.vector_store %arg14[%c1_114, %c0_115, %c0_116], %352 {strides = array<i32>} : memref<4x2x32xf32, #tpu.memory_space<vmem>>, vector<1x2x32xf32>,
    %353 = vector.extract_strided_slice %314 {offsets = [2, 0, 0], sizes = [1, 2, 32], strides = [1, 1, 1]} : vector<4x2x32xf32> to vector<1x2x32xf32>
    %354 = vector.shape_cast %353 : vector<1x2x32xf32> to vector<2x32xf32>
    %355 = vector.shape_cast %354 : vector<2x32xf32> to vector<2x1x32xf32>
    "tpu.trace_start"() <{level = 10 : i32, message = "bqh,bsh->bqs"}> : () -> ()
    %cst_117 = arith.constant dense<0.000000e+00> : vector<2x1x8xf32>
    %356 = tpu.matmul %355, %3, %cst_117 {dimension_numbers = #tpu.dot_dimension_numbers<[2], [2], [1], [1], [0, 0, 0, 1, 1, 1], [0], [0]>} : vector<2x1x32xf32>, vector<2x8x32xf32>, vector<2x1x8xf32> -> vector<2x1x8xf32>
    "tpu.trace_stop"() : () -> ()
    %cst_118 = arith.constant dense<0xFF800000> : vector<2x1xf32>
    %357 = vector.multi_reduction <maximumf>, %356, %cst_118 [2] : vector<2x1x8xf32> to vector<2x1xf32>
    %358 = vector.shape_cast %357 : vector<2x1xf32> to vector<2x1x1xf32>
    %359 = vector.broadcast %358 : vector<2x1x1xf32> to vector<2x1x8xf32>
    %360 = arith.subf %356, %359 : vector<2x1x8xf32>
    %361 = math.exp %360 : vector<2x1x8xf32>
    %cst_119 = arith.constant dense<0.000000e+00> : vector<2x1xf32>
    %362 = vector.multi_reduction <add>, %361, %cst_119 [2] : vector<2x1x8xf32> to vector<2x1xf32>
    %363 = vector.shape_cast %362 : vector<2x1xf32> to vector<2x1x1xf32>
    %364 = tpu.reciprocal %363 {approx = true} : vector<2x1x1xf32> -> vector<2x1x1xf32>
    %365 = vector.broadcast %364 : vector<2x1x1xf32> to vector<2x1x8xf32>
    %366 = arith.mulf %361, %365 : vector<2x1x8xf32>
    "tpu.trace_start"() <{level = 10 : i32, message = "bqs,bsh->bqh"}> : () -> ()
    %cst_120 = arith.constant dense<0.000000e+00> : vector<2x1x32xf32>
    %367 = tpu.matmul %366, %3, %cst_120 {dimension_numbers = #tpu.dot_dimension_numbers<[2], [1], [1], [2], [0, 0, 0, 1, 1, 2], [0], [0]>} : vector<2x1x8xf32>, vector<2x8x32xf32>, vector<2x1x32xf32> -> vector<2x1x32xf32>
    "tpu.trace_stop"() : () -> ()
    %368 = vector.shape_cast %367 : vector<2x1x32xf32> to vector<2x32xf32>
    %c2_121 = arith.constant 2 : index
    %c0_122 = arith.constant 0 : index
    %c0_123 = arith.constant 0 : index
    %369 = vector.load %arg14[%c2_121, %c0_122, %c0_123] : memref<4x2x32xf32, #tpu.memory_space<vmem>>, vector<1x2x32xf32>
    %370 = vector.shape_cast %369 : vector<1x2x32xf32> to vector<2x32xf32>
    %371 = vector.shape_cast %368 : vector<2x32xf32> to vector<1x2x32xf32>
    tpu.vector_store %arg14[%c2_121, %c0_122, %c0_123], %371 {strides = array<i32>} : memref<4x2x32xf32, #tpu.memory_space<vmem>>, vector<1x2x32xf32>,
    %372 = vector.extract_strided_slice %314 {offsets = [3, 0, 0], sizes = [1, 2, 32], strides = [1, 1, 1]} : vector<4x2x32xf32> to vector<1x2x32xf32>
    %373 = vector.shape_cast %372 : vector<1x2x32xf32> to vector<2x32xf32>
    %374 = vector.shape_cast %373 : vector<2x32xf32> to vector<2x1x32xf32>
    "tpu.trace_start"() <{level = 10 : i32, message = "bqh,bsh->bqs"}> : () -> ()
    %cst_124 = arith.constant dense<0.000000e+00> : vector<2x1x8xf32>
    %375 = tpu.matmul %374, %3, %cst_124 {dimension_numbers = #tpu.dot_dimension_numbers<[2], [2], [1], [1], [0, 0, 0, 1, 1, 1], [0], [0]>} : vector<2x1x32xf32>, vector<2x8x32xf32>, vector<2x1x8xf32> -> vector<2x1x8xf32>
    "tpu.trace_stop"() : () -> ()
    %cst_125 = arith.constant dense<0xFF800000> : vector<2x1xf32>
    %376 = vector.multi_reduction <maximumf>, %375, %cst_125 [2] : vector<2x1x8xf32> to vector<2x1xf32>
    %377 = vector.shape_cast %376 : vector<2x1xf32> to vector<2x1x1xf32>
    %378 = vector.broadcast %377 : vector<2x1x1xf32> to vector<2x1x8xf32>
    %379 = arith.subf %375, %378 : vector<2x1x8xf32>
    %380 = math.exp %379 : vector<2x1x8xf32>
    %cst_126 = arith.constant dense<0.000000e+00> : vector<2x1xf32>
    %381 = vector.multi_reduction <add>, %380, %cst_126 [2] : vector<2x1x8xf32> to vector<2x1xf32>
    %382 = vector.shape_cast %381 : vector<2x1xf32> to vector<2x1x1xf32>
    %383 = tpu.reciprocal %382 {approx = true} : vector<2x1x1xf32> -> vector<2x1x1xf32>
    %384 = vector.broadcast %383 : vector<2x1x1xf32> to vector<2x1x8xf32>
    %385 = arith.mulf %380, %384 : vector<2x1x8xf32>
    "tpu.trace_start"() <{level = 10 : i32, message = "bqs,bsh->bqh"}> : () -> ()
    %cst_127 = arith.constant dense<0.000000e+00> : vector<2x1x32xf32>
    %386 = tpu.matmul %385, %3, %cst_127 {dimension_numbers = #tpu.dot_dimension_numbers<[2], [1], [1], [2], [0, 0, 0, 1, 1, 2], [0], [0]>} : vector<2x1x8xf32>, vector<2x8x32xf32>, vector<2x1x32xf32> -> vector<2x1x32xf32>
    "tpu.trace_stop"() : () -> ()
    %387 = vector.shape_cast %386 : vector<2x1x32xf32> to vector<2x32xf32>
    %c3_128 = arith.constant 3 : index
    %c0_129 = arith.constant 0 : index
    %c0_130 = arith.constant 0 : index
    %388 = vector.load %arg14[%c3_128, %c0_129, %c0_130] : memref<4x2x32xf32, #tpu.memory_space<vmem>>, vector<1x2x32xf32>
    %389 = vector.shape_cast %388 : vector<1x2x32xf32> to vector<2x32xf32>
    %390 = vector.shape_cast %387 : vector<2x32xf32> to vector<1x2x32xf32>
    tpu.vector_store %arg14[%c3_128, %c0_129, %c0_130], %390 {strides = array<i32>} : memref<4x2x32xf32, #tpu.memory_space<vmem>>, vector<1x2x32xf32>,
    %c0_131 = arith.constant 0 : index
    %c0_132 = arith.constant 0 : index
    %c0_133 = arith.constant 0 : index
    %391 = vector.load %arg14[%c0_131, %c0_132, %c0_133] : memref<4x2x32xf32, #tpu.memory_space<vmem>>, vector<4x2x32xf32>
    %392 = vector.shape_cast %391 : vector<4x2x32xf32> to vector<8x32xf32>
    %cst_134 = arith.constant dense<0.000000e+00> : vector<8x32xf32>
    %393 = tpu.matmul %392, %19, %cst_134 {dimension_numbers = #tpu.dot_dimension_numbers<[1], [0], [0], [1], [0, 0, 1, 1], [], []>} : vector<8x32xf32>, vector<32x32xf32>, vector<8x32xf32> -> vector<8x32xf32>
    %cst_135 = arith.constant dense<0.000000e+00> : vector<8x32xf32>
    %394 = tpu.matmul %312, %21, %cst_135 {dimension_numbers = #tpu.dot_dimension_numbers<[1], [0], [0], [1], [0, 0, 1, 1], [], []>} : vector<8x32xf32>, vector<32x32xf32>, vector<8x32xf32> -> vector<8x32xf32>
    %395 = arith.addf %393, %394 : vector<8x32xf32>
    %396 = math.tanh %395 : vector<8x32xf32>
    %397 = vector.shape_cast %396 : vector<8x32xf32> to vector<4x2x32xf32>
    %c0_136 = arith.constant 0 : index
    %c0_137 = arith.constant 0 : index
    %c0_138 = arith.constant 0 : index
    %398 = vector.load %arg10[%c0_136, %c0_137, %c0_138] : memref<4x2x32xf32, #tpu.memory_space<vmem>>, vector<4x2x32xf32>
    tpu.vector_store %arg10[%c0_136, %c0_137, %c0_138], %397 {strides = array<i32>} : memref<4x2x32xf32, #tpu.memory_space<vmem>>, vector<4x2x32xf32>,
    return
  }
  func.func @transform_0(%arg0: i32) -> (i32, i32, i32) {
    %c0_i32 = arith.constant 0 : i32
    %c0_i32_0 = arith.constant 0 : i32
    %c0_i32_1 = arith.constant 0 : i32
    return %arg0, %c0_i32, %c0_i32_0 : i32, i32, i32
  }
  func.func @transform_1(%arg0: i32) -> (i32, i32, i32) {
    %c0_i32 = arith.constant 0 : i32
    %c0_i32_0 = arith.constant 0 : i32
    %c0_i32_1 = arith.constant 0 : i32
    %c0_i32_2 = arith.constant 0 : i32
    return %c0_i32, %c0_i32_0, %c0_i32_1 : i32, i32, i32
  }
  func.func @transform_2(%arg0: i32) -> (i32, i32, i32) {
    %c0_i32 = arith.constant 0 : i32
    %c0_i32_0 = arith.constant 0 : i32
    %c0_i32_1 = arith.constant 0 : i32
    %c0_i32_2 = arith.constant 0 : i32
    return %c0_i32, %c0_i32_0, %c0_i32_1 : i32, i32, i32
  }
  func.func @transform_3(%arg0: i32) -> (i32, i32) {
    %c0_i32 = arith.constant 0 : i32
    %c0_i32_0 = arith.constant 0 : i32
    %c0_i32_1 = arith.constant 0 : i32
    return %c0_i32, %c0_i32_0 : i32, i32
  }
  func.func @transform_4(%arg0: i32) -> (i32, i32) {
    %c0_i32 = arith.constant 0 : i32
    %c0_i32_0 = arith.constant 0 : i32
    %c0_i32_1 = arith.constant 0 : i32
    return %c0_i32, %c0_i32_0 : i32, i32
  }
  func.func @transform_5(%arg0: i32) -> (i32, i32) {
    %c0_i32 = arith.constant 0 : i32
    %c0_i32_0 = arith.constant 0 : i32
    %c0_i32_1 = arith.constant 0 : i32
    return %c0_i32, %c0_i32_0 : i32, i32
  }
  func.func @transform_6(%arg0: i32) -> (i32, i32) {
    %c0_i32 = arith.constant 0 : i32
    %c0_i32_0 = arith.constant 0 : i32
    %c0_i32_1 = arith.constant 0 : i32
    return %c0_i32, %c0_i32_0 : i32, i32
  }
  func.func @transform_7(%arg0: i32) -> (i32, i32, i32) {
    %c0_i32 = arith.constant 0 : i32
    %c0_i32_0 = arith.constant 0 : i32
    %c0_i32_1 = arith.constant 0 : i32
    %c0_i32_2 = arith.constant 0 : i32
    return %c0_i32, %c0_i32_0, %c0_i32_1 : i32, i32, i32
  }
  func.func @transform_8(%arg0: i32) -> (i32, i32, i32) {
    %c0_i32 = arith.constant 0 : i32
    %c0_i32_0 = arith.constant 0 : i32
    %c0_i32_1 = arith.constant 0 : i32
    %c0_i32_2 = arith.constant 0 : i32
    return %c0_i32, %c0_i32_0, %c0_i32_1 : i32, i32, i32
  }
  func.func @transform_9(%arg0: i32) -> (i32, i32, i32) {
    %c0_i32 = arith.constant 0 : i32
    %c0_i32_0 = arith.constant 0 : i32
    %c0_i32_1 = arith.constant 0 : i32
    return %arg0, %c0_i32, %c0_i32_0 : i32, i32, i32
  }
  func.func @transform_10(%arg0: i32) -> (i32, i32, i32) {
    %c0_i32 = arith.constant 0 : i32
    %c0_i32_0 = arith.constant 0 : i32
    %c0_i32_1 = arith.constant 0 : i32
    %c0_i32_2 = arith.constant 0 : i32
    return %c0_i32, %c0_i32_0, %c0_i32_1 : i32, i32, i32
  }
}

</mosaic_0001>

<bundles_post_ra>
// kernel: tpu_custom_call.1
= control target key start
LH: loop header
LB: loop body
LE: loop exit
PB: predicated region body
PF: predicated region fallthrough
CT: control target
= control target key end

     0   :  { %s5867_s0 = inlined_call_operand.hbm [shape: f32[8,2,32], index: 0, kind: input, shape index: {}]   ;;  %s5868_s1 = inlined_call_operand.hbm [shape: f32[2,2,32], index: 1, kind: input, shape index: {}]   ;;  %s5869_s2 = inlined_call_operand.hbm [shape: f32[2,8,32], index: 2, kind: input, shape index: {}]   ;;  %s5870_s3 = inlined_call_operand.hbm [shape: f32[32,96], index: 3, kind: input, shape index: {}]   ;;  %s5871_s4 = inlined_call_operand.hbm [shape: f32[32,96], index: 4, kind: input, shape index: {}]   ;;  %s5872_s5 = inlined_call_operand.hbm [shape: f32[32,96], index: 5, kind: input, shape index: {}]   ;;  %s5873_s6 = inlined_call_operand.hbm [shape: f32[32,96], index: 6, kind: input, shape index: {}]   ;;  %s5874_s7 = inlined_call_operand.vmem [shape: f32[2,2,96], index: 7, kind: input, shape index: {}]   ;;  %s5875_s8 = inlined_call_operand.hbm [shape: f32[3,32,32], index: 8, kind: input, shape index: {}]   ;;  %s5876_s9 = inlined_call_operand.hbm [shape: f32[8,2,32], index: 9, kind: output, shape index: {0}]   ;;  %s5877_s10 = inlined_call_operand.hbm [shape: f32[2,2,32], index: 10, kind: output, shape index: {1}]  }
   0x1   :  { %5888 = sst [smem:[#allocation29_spill]] %s5868_s1 }
   0x2   :  { %5889 = sst [smem:[#allocation30_spill]] %s5876_s9 }
   0x3   :  { %5890 = sst [smem:[#allocation31_spill]] %s5877_s10 }
   0x4   :  { %16 = vsyncpa [#allocation6], 0 }
   0x5   :  { %18 = vsyncpa [#allocation6 + $0x1], 0 }
   0x6   :  { %19 = vsyncpa [#allocation9], 0 }
   0x7   :  { %20 = vsyncpa [#allocation12], 0 }
   0x8   :  { %21 = vsyncpa [#allocation15], 0 }
   0x9   :  { %22 = vsyncpa [#allocation18], 0 }
   0xa   :  { %23 = vsyncpa [#allocation7], 0 }
   0xb   :  { %25 = vsyncpa [#allocation7 + $0x1], 0 }
   0xc   :  { %26 = vsyncpa [#allocation21], 0  ;;  %s5026_s13 = smov 0   ;;  %s5028_s14 = smov 0  }
   0xd   :  { %s5030_s15 = smov 0   ;;  %s5032_s16 = smov 0  }
   0xe LB: > { %s4948_s17 = smov [#allocation8]   ;;  %s5047_s19 = sadd.s32 4294967295, %s4946_s16   ;;  %s4946_s16 = sphi %s5032_s16, %s5927_s16   ;;  %s4942_s15 = sphi %s5030_s15, %s5926_s15   ;;  %s4938_s14 = sphi %s5028_s14, %s5925_s14   ;;  %s4934_s13 = sphi %s5026_s13, %s5924_s13  }
   0xf   : > { %s290_s18 = sshll.u32 %s4948_s17, 4  ;;  %p3769_p0 = scmp.ge.s32.totalorder %s4946_s16, 1  ;;  %s5053_s18 = int_to_ptr.vmem [resolvable:$true] %s290_s18 }
  0x10   : > { %p5881_p1 = scmp.eq.s32.totalorder %s5047_s19, 0  ;;  %p278_p2 = scmp.lt.s32.totalorder %s4946_s16, 3 }
  0x11   : > { %s4949_s22 = smov [#allocation11]   ;;  %s4950_s24 = smov [#allocation14]  }
  0x12   : > { %p5055_p4 = pnand %p3769_p0, %p278_p2  ;;  %s316_s23 = sshll.u32 %s4949_s22, 4  ;;  %s5068_s23 = int_to_ptr.vmem [resolvable:$true] %s316_s23 }
  0x13   : > { %s5070_s25 = sshll.u32 %s4950_s24, 4  ;;  %s5893_s1 = sld [smem:[#allocation29_spill]]  ;;  %s343_s25 = int_to_ptr.vmem [resolvable:$true] %s5070_s25 }
  0x14   : > { %s5891_s20 = scalar_select %p5055_p4, 1, 0 }
  0x15   : > { %p4425_p6 = pneg %p5055_p4 }
  0x17   : > { %p5064_p7 = pnand %p4425_p6, %p5881_p1 }
  0x19   : > { %s4608_s28 = scalar_lea.hbm %s5893_s1, 64  ;;  %p5080_p9 = pneg %p5064_p7 }
  0x1a   : > { %p4609_p8 = scmp.ne.s32.totalorder %s5893_s1, %s4608_s28  ;;  %p4615_p12 = scmp.lt.u32.totalorder %s4608_s28, %s5893_s1 }
  0x1c   : > { %p4611_p10 = pnand %p5080_p9, %p4609_p8 }
  0x1e   : > { %p4612_p11 = pneg %p4611_p10 }
  0x20   : > { %p4617_p13 = pnand %p4615_p12, %p4612_p11 }
  0x22   : > { %4620 = shalt.err (!%p4617_p13)
}
  0x23   : > { %s4621_s22 = scalar_lea.vmem %s5053_s18, 64  ;;  %p4629_p5 = scmp.lt.s32.totalorder %s5053_s18, %s5053_s18 }
  0x24   : > { %p4622_p0 = scmp.ne.s32.totalorder %s5053_s18, %s4621_s22  ;;  %p4630_p3 = scmp.lt.s32.totalorder %s4621_s22, %s4621_s22 }
  0x26   : > { %p4624_p2 = pnand %p4622_p0, %p5080_p9  ;;  %p4631_p8 = por %p4630_p3, %p4629_p5 }
  0x28   : > { %p4625_p6 = pneg %p4624_p2 }
  0x2a   : > { %p4632_p10 = pnand %p4631_p8, %p4625_p6 }
  0x2c   : > { %4635 = shalt.err (!%p4632_p10)
}
  0x2d   : > { %s5880_s24 = smov 32   ;;  %s5883_s26 = smov 2  }
  0x2e   : > { %4428 = dma.hbm_to_vmem [thread:$0]  (!%p5064_p7), %s5893_s1, 64, %s5053_s18, [#allocation9], %s5880_s24, %s5880_s24, %s5883_s26  }
  0x2f   : > { %s4636_s12 = scalar_lea.hbm %s5870_s3, 512 }
  0x30   : > { %p4637_p3 = scmp.ne.s32.totalorder %s5870_s3, %s4636_s12  ;;  %p4643_p12 = scmp.lt.u32.totalorder %s4636_s12, %s5870_s3 }
  0x32   : > { %p4639_p5 = pnand %p4637_p3, %p5080_p9 }
  0x34   : > { %p4640_p11 = pneg %p4639_p5 }
  0x36   : > { %p4645_p13 = pnand %p4643_p12, %p4640_p11 }
  0x38   : > { %4648 = shalt.err (!%p4645_p13)
}
  0x39   : > { %s4649_s18 = scalar_lea.vmem %s5068_s23, 512  ;;  %p4657_p8 = scmp.lt.s32.totalorder %s5068_s23, %s5068_s23 }
  0x3a   : > { %p4650_p0 = scmp.ne.s32.totalorder %s5068_s23, %s4649_s18  ;;  %p4658_p10 = scmp.lt.s32.totalorder %s4649_s18, %s4649_s18 }
  0x3c   : > { %p4652_p2 = pnand %p4650_p0, %p5080_p9  ;;  %p4659_p3 = por %p4658_p10, %p4657_p8 }
  0x3e   : > { %p4653_p6 = pneg %p4652_p2 }
  0x40   : > { %p4660_p5 = pnand %p4659_p3, %p4653_p6 }
  0x42   : > { %4663 = shalt.err (!%p4660_p5)
}
  0x43   : > { %s4953_s27 = smov 128   ;;  %s4954_s9 = smov 8  }
  0x44   : > { %4434 = dma.hbm_to_vmem [thread:$0]  (!%p5064_p7), %s5870_s3, 512, %s5068_s23, [#allocation12], %s4953_s27, %s4953_s27, %s4954_s9  }
  0x45   : > { %s4664_s12 = scalar_lea.hbm %s5872_s5, 512 }
  0x46   : > { %p4665_p11 = scmp.ne.s32.totalorder %s5872_s5, %s4664_s12  ;;  %p4671_p0 = scmp.lt.u32.totalorder %s4664_s12, %s5872_s5 }
  0x48   : > { %p4667_p12 = pnand %p4665_p11, %p5080_p9 }
  0x4a   : > { %p4668_p13 = pneg %p4667_p12 }
  0x4c   : > { %p4673_p2 = pnand %p4671_p0, %p4668_p13 }
  0x4e   : > { %4676 = shalt.err (!%p4673_p2)
}
  0x4f   : > { %s4677_s10 = scalar_lea.vmem %s343_s25, 512  ;;  %p4685_p3 = scmp.lt.s32.totalorder %s343_s25, %s343_s25 }
  0x50   : > { %p4678_p6 = scmp.ne.s32.totalorder %s343_s25, %s4677_s10  ;;  %p4686_p5 = scmp.lt.s32.totalorder %s4677_s10, %s4677_s10 }
  0x52   : > { %p4680_p8 = pnand %p4678_p6, %p5080_p9  ;;  %p4687_p1 = por %p4686_p5, %p4685_p3 }
  0x54   : > { %p4681_p10 = pneg %p4680_p8 }
  0x56   : > { %p4688_p4 = pnand %p4687_p1, %p4681_p10 }
  0x58   : > { %4691 = shalt.err (!%p4688_p4)
}
  0x59   : > { %4440 = dma.hbm_to_vmem [thread:$0]  (!%p5064_p7), %s5872_s5, 512, %s343_s25, [#allocation15], %s4953_s27, %s4953_s27, %s4954_s9  }
  0x5a   : > { %s4955_s28 = smov [#allocation10]   ;;  %s4956_s30 = smov [#allocation13]  }
  0x5b   : > { %s303_s29 = sshll.u32 %s4955_s28, 4  ;;  %s329_s12 = sshll.u32 %s4956_s30, 4  ;;  %s304_s29 = int_to_ptr.vmem [resolvable:$true] %s303_s29  ;;  %s330_s12 = int_to_ptr.vmem [resolvable:$true] %s329_s12 }
  0x5c   : > { %s4692_s18 = scalar_lea.hbm %s5869_s2, 256 }
  0x5d   : > { %p4693_p1 = scmp.ne.s32.totalorder %s5869_s2, %s4692_s18  ;;  %p4699_p12 = scmp.lt.u32.totalorder %s4692_s18, %s5869_s2 }
  0x5f   : > { %p4695_p4 = pnand %p4693_p1, %p5080_p9 }
  0x61   : > { %p4696_p11 = pneg %p4695_p4 }
  0x63   : > { %p4701_p13 = pnand %p4699_p12, %p4696_p11 }
  0x65   : > { %4704 = shalt.err (!%p4701_p13)
}
  0x66   : > { %s4705_s25 = scalar_lea.vmem %s304_s29, 256  ;;  %p4713_p8 = scmp.lt.s32.totalorder %s304_s29, %s304_s29 }
  0x67   : > { %p4706_p0 = scmp.ne.s32.totalorder %s304_s29, %s4705_s25  ;;  %p4714_p10 = scmp.lt.s32.totalorder %s4705_s25, %s4705_s25 }
  0x69   : > { %p4708_p2 = pnand %p4706_p0, %p5080_p9  ;;  %p4715_p3 = por %p4714_p10, %p4713_p8 }
  0x6b   : > { %p4709_p6 = pneg %p4708_p2 }
  0x6d   : > { %p4716_p5 = pnand %p4715_p3, %p4709_p6 }
  0x6f   : > { %4719 = shalt.err (!%p4716_p5)
}
  0x70   : > { %4431 = dma.hbm_to_vmem [thread:$0]  (!%p5064_p7), %s5869_s2, 256, %s304_s29, [#allocation9], %s4953_s27, %s4953_s27, %s4954_s9  }
  0x71   : > { %s4720_s30 = scalar_lea.hbm %s5871_s4, 512 }
  0x72   : > { %p4721_p1 = scmp.ne.s32.totalorder %s5871_s4, %s4720_s30  ;;  %p4727_p12 = scmp.lt.u32.totalorder %s4720_s30, %s5871_s4 }
  0x74   : > { %p4723_p4 = pnand %p4721_p1, %p5080_p9 }
  0x76   : > { %p4724_p11 = pneg %p4723_p4 }
  0x78   : > { %p4729_p13 = pnand %p4727_p12, %p4724_p11 }
  0x7a   : > { %4732 = shalt.err (!%p4729_p13)
}
  0x7b   : > { %s4733_s23 = scalar_lea.vmem %s330_s12, 512  ;;  %p4741_p8 = scmp.lt.s32.totalorder %s330_s12, %s330_s12 }
  0x7c   : > { %p4734_p0 = scmp.ne.s32.totalorder %s330_s12, %s4733_s23  ;;  %p4742_p10 = scmp.lt.s32.totalorder %s4733_s23, %s4733_s23 }
  0x7e   : > { %p4736_p2 = pnand %p4734_p0, %p5080_p9  ;;  %p4743_p3 = por %p4742_p10, %p4741_p8 }
  0x80   : > { %p4737_p6 = pneg %p4736_p2 }
  0x82   : > { %p4744_p5 = pnand %p4743_p3, %p4737_p6 }
  0x84   : > { %4747 = shalt.err (!%p4744_p5)
}
  0x85   : > { %4437 = dma.hbm_to_vmem [thread:$0]  (!%p5064_p7), %s5871_s4, 512, %s330_s12, [#allocation12], %s4953_s27, %s4953_s27, %s4954_s9  }
  0x86   : > { %s4957_s1 = smov [#allocation16]   ;;  %s4958_s24 = smov [#allocation17]  }
  0x87   : > { %s355_s26 = sshll.u32 %s4957_s1, 4  ;;  %s371_s28 = sshll.u32 %s4958_s24, 4  ;;  %s356_s26 = int_to_ptr.vmem [resolvable:$true] %s355_s26  ;;  %s372_s28 = int_to_ptr.vmem [resolvable:$true] %s371_s28 }
  0x88   : > { %s4748_s22 = scalar_lea.hbm %s5873_s6, 512 }
  0x89   : > { %p4749_p1 = scmp.ne.s32.totalorder %s5873_s6, %s4748_s22  ;;  %p4755_p12 = scmp.lt.u32.totalorder %s4748_s22, %s5873_s6 }
  0x8b   : > { %p4751_p4 = pnand %p4749_p1, %p5080_p9 }
  0x8d   : > { %p4752_p11 = pneg %p4751_p4 }
  0x8f   : > { %p4757_p13 = pnand %p4755_p12, %p4752_p11 }
  0x91   : > { %4760 = shalt.err (!%p4757_p13)
}
  0x92   : > { %s4761_s12 = scalar_lea.vmem %s356_s26, 512  ;;  %p4769_p8 = scmp.lt.s32.totalorder %s356_s26, %s356_s26 }
  0x93   : > { %p4762_p0 = scmp.ne.s32.totalorder %s356_s26, %s4761_s12  ;;  %p4770_p10 = scmp.lt.s32.totalorder %s4761_s12, %s4761_s12 }
  0x95   : > { %p4764_p2 = pnand %p4762_p0, %p5080_p9  ;;  %p4771_p3 = por %p4770_p10, %p4769_p8 }
  0x97   : > { %p4765_p6 = pneg %p4764_p2 }
  0x99   : > { %p4772_p5 = pnand %p4771_p3, %p4765_p6 }
  0x9b   : > { %4775 = shalt.err (!%p4772_p5)
}
  0x9c   : > { %4443 = dma.hbm_to_vmem [thread:$0]  (!%p5064_p7), %s5873_s6, 512, %s356_s26, [#allocation15], %s4953_s27, %s4953_s27, %s4954_s9  }
  0x9d   : > { %s4776_s17 = scalar_lea.hbm %s5875_s8, 1536 }
  0x9e   : > { %p4777_p1 = scmp.ne.s32.totalorder %s5875_s8, %s4776_s17  ;;  %p4783_p12 = scmp.lt.u32.totalorder %s4776_s17, %s5875_s8 }
  0xa0   : > { %p4779_p4 = pnand %p4777_p1, %p5080_p9 }
  0xa2   : > { %p4780_p11 = pneg %p4779_p4 }
  0xa4   : > { %p4785_p13 = pnand %p4783_p12, %p4780_p11 }
  0xa6   : > { %4788 = shalt.err (!%p4785_p13)
}
  0xa7   : > { %s4789_s29 = scalar_lea.vmem %s372_s28, 1536  ;;  %p4797_p8 = scmp.lt.s32.totalorder %s372_s28, %s372_s28 }
  0xa8   : > { %p4790_p0 = scmp.ne.s32.totalorder %s372_s28, %s4789_s29  ;;  %p4798_p10 = scmp.lt.s32.totalorder %s4789_s29, %s4789_s29 }
  0xaa   : > { %p4792_p2 = pnand %p4790_p0, %p5080_p9  ;;  %p4799_p3 = por %p4798_p10, %p4797_p8 }
  0xac   : > { %p4793_p6 = pneg %p4792_p2 }
  0xae   : > { %p4800_p5 = pnand %p4799_p3, %p4793_p6 }
  0xb0   : > { %4803 = shalt.err (!%p4800_p5)
}
  0xb1   : > { %4446 = dma.hbm_to_vmem [thread:$0]  (!%p5064_p7), %s5875_s8, 1536, %s372_s28, [#allocation18], %s4953_s27, %s4953_s27, %s4954_s9  }
  0xb2   : > { %s3768_s21 = sadd.s32 4294967294, %s4946_s16   ;;  %s5238_s11 = sadd.s32 1, %s4946_s16  }
  0xb3   : > { %s39_s25 = sadd.s32 1, %s4942_s15  ;;  %s36_s1 = ssub.s32 %s4946_s16, %s5238_s11 }
  0xb4   : > { %p46_p9 = scmp.ne.s32.totalorder %s4942_s15, %s4938_s14  ;;  %p37_p1 = scmp.eq.s32.totalorder %s36_s1, 0 }
  0xb5   : > { %p47_p4 = scmp.eq.s32.totalorder %s4946_s16, 0  ;;  %p52_p11 = scmp.ne.s32.totalorder %s4938_s14, %s4934_s13 }
  0xb6   : > { %p5884_p12 = scmp.eq.s32.totalorder %s5047_s19, 1  ;;  %p5895_p0 = scmp.eq.s32.totalorder %s5047_s19, 0 }
  0xb7   : > { %s5250_s24 = scalar_select %p37_p1, %s4942_s15, %s39_s25  }
  0xb8   : > { %p48_p13 = por %p47_p4, %p46_p9  ;;  %p5254_p2 = por %p5895_p0, %p52_p11 }
  0xb9   : > { %p5260_p7 = por %p5884_p12, %p46_p9  ;;  %p250_p6 = scmp.eq.s32.totalorder %s3768_s21, 1 }
  0xba   : > { %p4462_p8 = scmp.lt.s32.totalorder %s4946_s16, 2  ;;  %s385_s9 = sand.u32 1, %s4942_s15  }
  0xbb   : > { %s5897_s27 = scalar_select %p5260_p7, 1, 0 }
  0xbc   : > { %p5266_p10 = por %p250_p6, %p52_p11  ;;  %s3778_s17 = sshll.u32 %s385_s9, 3 }
  0xbd   : > { %s3855_s22 = sshll.u32 %s4946_s16, 7  ;;  %s389_s29 = scalar_lea.vmem [#allocation5], %s3778_s17 }
  0xbe   : > { %s5898_s28 = scalar_select %p5266_p10, 1, 0 }
  0xbf   : > { %s5274_s23 = scalar_lea.hbm %s5867_s0, %s3855_s22  ;;  %s396_s26 = sshll.u32 %s389_s29, 4  ;;  %s5280_s26 = int_to_ptr.vmem [resolvable:$true] %s396_s26 }
  0xc0   : > { %p5276_p3 = pnand %p4462_p8, %p48_p13  ;;  %s5282_s21 = scalar_lea.sflag [#allocation6], %s385_s9 }
  0xc1   : > { %s4804_s25 = scalar_lea.hbm %s5274_s23, 128  ;;  %s4809_s22 = scalar_lea.hbm %s5867_s0, 256 }
  0xc2   : > { %p4805_p5 = scmp.ne.s32.totalorder %s5274_s23, %s4804_s25  ;;  %p4806_p9 = pneg %p5276_p3 }
  0xc3   : > { %p4810_p11 = scmp.lt.u32.totalorder %s5274_s23, %s5867_s0  ;;  %p4811_p13 = scmp.lt.u32.totalorder %s4809_s22, %s4804_s25 }
  0xc4   : > { %p4807_p1 = pnand %p4806_p9, %p4805_p5  ;;  %p4813_p6 = scmp.lt.u32.totalorder %s4804_s25, %s5274_s23 }
  0xc5   : > { %p4812_p0 = por %p4811_p13, %p4810_p11 }
  0xc6   : > { %p4808_p4 = pneg %p4807_p1 }
  0xc7   : > { %p4814_p8 = por %p4813_p6, %p4812_p0 }
  0xc9   : > { %p4815_p12 = pnand %p4814_p8, %p4808_p4 }
  0xcb   : > { %4818 = shalt.err (!%p4815_p12)
}
  0xcc   : > { %s4819_s9 = scalar_lea.vmem %s5280_s26, 128  ;;  %s4959_s29 = smov [#allocation5]  }
  0xcd   : > { %p4820_p5 = scmp.ne.s32.totalorder %s5280_s26, %s4819_s9  ;;  %s4824_s1 = sshll.u32 %s4959_s29, 4  ;;  %s4825_s1 = int_to_ptr.vmem [resolvable:$false] %s4824_s1 }
  0xce   : > { %s4826_s17 = scalar_lea.vmem %s4825_s1, 256  ;;  %p4827_p7 = scmp.lt.s32.totalorder %s5280_s26, %s4825_s1 }
  0xcf   : > { %p4822_p1 = pnand %p4820_p5, %p4806_p9  ;;  %p4828_p11 = scmp.lt.s32.totalorder %s4826_s17, %s4819_s9 }
  0xd1   : > { %p4823_p10 = pneg %p4822_p1  ;;  %p4829_p13 = por %p4828_p11, %p4827_p7 }
  0xd3   : > { %p4830_p0 = pnand %p4829_p13, %p4823_p10 }
  0xd5   : > { %4833 = shalt.err (!%p4830_p0)
}
  0xd6   : > { %s5900_s25 = smov 2   ;;  %s5901_s22 = smov 32  }
  0xd7   : > { %4450 = dma.hbm_to_vmem [thread:$0]  (!%p5276_p3), %s5274_s23, 128, %s5280_s26, %s5282_s21, %s5901_s22, %s5901_s22, %s5900_s25  }
  0xd8   : > { %p5902_p12 = scmp.ne.s32.totalorder %s5891_s20, 0 }
  0xd9   : > { %s5316_s18 = sand.u32 (!%p5902_p12), 1, %s4938_s14  }
  0xda   : > { %408 = sbr.rel (%p5902_p12) target bundleno = 6490 (0x195a), region = 56  ;;  %s3782_s10 = sshll.u32 (!%p5902_p12), %s5316_s18, 3 }
  0xdb   : > { %s411_s9 = scalar_lea.sflag (!%p5902_p12), [#allocation6], %s5316_s18  ;;  %s5320_s29 = scalar_lea.vmem (!%p5902_p12), [#allocation5], %s3782_s10 }
  0xe1   : > { %4905 = dma.done.wait (%p5254_p2), %s411_s9, 128  }
  0xe2   : > { %4907 = vsyncadd (%p5254_p2), %s411_s9, 4294967168  ;;  %p5903_p7 = scmp.eq.s32.totalorder %s5047_s19, 0 }
  0xe4   : > { %4909 = dma.done.wait (%p5903_p7), [#allocation9], 320   ;;  %p5904_p10 = pmov %p5903_p7 }
  0xe5   : > { %p5905_p3 = pmov %p5903_p7 }
  0xe6   : > { %4911 = vsyncadd (%p5904_p10), [#allocation9], 4294966976 }
  0xe7   : > { %4913 = dma.done.wait (%p5905_p3), [#allocation12], 1024   ;;  %p5906_p9 = pmov %p5905_p3 }
  0xe8   : > { %p5907_p4 = pmov %p5905_p3 }
  0xe9   : > { %4915 = vsyncadd (%p5906_p9), [#allocation12], 4294966272 }
  0xea   : > { %4917 = dma.done.wait (%p5907_p4), [#allocation15], 1024   ;;  %p5908_p6 = pmov %p5905_p3 }
  0xeb   : > { %p5909_p2 = pmov %p5905_p3 }
  0xec   : > { %4919 = vsyncadd (%p5908_p6), [#allocation15], 4294966272 }
  0xed   : > { %4921 = dma.done.wait (%p5909_p2), [#allocation18], 1536   ;;  %p5910_p8 = pmov %p5909_p2 }
  0xee   : > { %s5342_s20 = scalar_lea.vmem [#allocation19], %s3782_s10  ;;  %p5911_p5 = scmp.ne.s32.totalorder %s5047_s19, 0 }
  0xef   : > { %4923 = vsyncadd (%p5910_p8), [#allocation18], 4294965760  ;;  %v485_v0 = vld [vmem:[#allocation8] sm:$0x3] (!%p5911_p5)  ;;  %vm487_vm0 = vcmask (!%p5911_p5), 254976  }
  0xf0   : > { %484 = sbr.rel (%p5911_p5) target bundleno = 247 (0xf7), region = 92  ;;  %v486_v1 = vld [vmem:[#allocation8 + $0x2] sm:$0x3] (!%p5911_p5)  ;;  %488 = vst.msk [vmem:[#allocation2] sm:$0x3] (!%p5911_p5), %vm487_vm0, %v485_v0 }
  0xf1   : > { %489 = vst.msk [vmem:[#allocation2 + $0x2] sm:$0x3] (!%p5911_p5), %vm487_vm0, %v486_v1 }
  0xf7 PF: > { %v5346_v2 = vld [vmem:[#allocation10] sm:$0xff]  ;;  %v5348_v3 = vld [vmem:[#allocation10 + $0x8] sm:$0xff]  ;;  %v5350_v4 = vld [vmem:[#allocation17] sm:$0xff]  ;;  %v4960_v8 = vmov 0.0|0.0   ;;  %vm4961_vm1 = vmmov 0   ;;  %v4962_v9 = vmov 0.0   ;;  %v529_v32 = vlaneseq }
  0xf8   : > { %v5352_v5 = vld [vmem:[#allocation17 + $0x8] sm:$0xff]  ;;  %v5354_v6 = vld [vmem:[#allocation17 + $0x10] sm:$0xff]  ;;  %v5356_v7 = vld [vmem:[#allocation17 + $0x18] sm:$0xff]  ;;  %4273 = vmatprep.subr.bf16.mxu1 %v4960_v8  ;;  %3992 = vmatprep.mubr.msk.f32.mxu1 %vm4961_vm1, %v4962_v9  ;;  %vm533_vm2 = vcmask 261120   ;;  %s4963_s26 = smov 64   ;;  %s4964_s12 = smov 96  }
  0xf9   : > { %v5361_v10 = vld [vmem:[#allocation17 + $0x20] sm:$0xff]  ;;  %v5363_v11 = vld [vmem:[#allocation17 + $0x28] sm:$0xff]  ;;  %v5365_v12 = vld [vmem:[#allocation17 + $0x30] sm:$0xff]  ;;  %4285 = vmatprep.subr.bf16.mxu0 %v4960_v8  ;;  %4014 = vmatprep.mubr.msk.f32.mxu0 %vm4961_vm1, %v4962_v9  ;;  %v5403_v33 = vshrl.u32 %v529_v32, 7  ;;  %s5886_s21 = smov 32   ;;  %vm902_vm3 = vcmask 254976  }
  0xfa   : > { %v5370_v13 = vld [vmem:[#allocation17 + $0x38] sm:$0xff]  ;;  %v5372_v14 = vld [vmem:[#allocation17 + $0x40] sm:$0xff]  ;;  %v5374_v15 = vld [vmem:[#allocation17 + $0x48] sm:$0xff]  ;;  %p3820_p1 = scmp.ne.s32.totalorder %s5047_s19, 1 }
  0xfb   : > { %v5376_v16 = vld [vmem:[#allocation17 + $0x50] sm:$0xff]  ;;  %v5378_v17 = vld [vmem:[#allocation17 + $0x58] sm:$0xff]  ;;  %v492_v18 = vld [vmem:[#allocation11] sm:$0xff]  ;;  %v609_v36 = vsub.s32 1, %v5403_v33  ;;  %v531_v42 = vsub.s32 0, %v5403_v33 }
  0xfc   : > { %v493_v19 = vld [vmem:[#allocation11 + $0x8] sm:$0xff]  ;;  %v494_v20 = vld [vmem:[#allocation11 + $0x10] sm:$0xff]  ;;  %v495_v21 = vld [vmem:[#allocation11 + $0x18] sm:$0xff] }
  0xfd   : > { %v5380_v22 = vpack.c.bf16 %v493_v19, %v492_v18  ;;  %v5383_v23 = vpack.c.bf16 %v495_v21, %v494_v20  ;;  %v496_v24 = vld [vmem:[#allocation13] sm:$0xff]  ;;  %v497_v25 = vld [vmem:[#allocation13 + $0x8] sm:$0xff]  ;;  %v498_v28 = vld [vmem:[#allocation13 + $0x10] sm:$0xff] }
  0xfe   : > { %v528_v26 = vld [vmem:[%s5320_s29] sm:$0x3]  ;;  %v5388_v27 = vpack.c.bf16 %v497_v25, %v496_v24  ;;  %v525_v31 = vld [vmem:[#allocation2] sm:$0x3]  ;;  %v507_v56 = vld [vmem:[#allocation16 + $0x10] sm:$0xff] }
  0xff   : > { %4275 = vmatpush3.bf16.msra.mxu1 %v5380_v22  ;;  %v499_v29 = vld [vmem:[#allocation13 + $0x18] sm:$0xff]  ;;  %v500_v37 = vld [vmem:[%s5874_s7] sm:$0x3]  ;;  %v505_v54 = vld [vmem:[#allocation16] sm:$0xff] }
 0x100   : > { %4276 = vmatprep.subr.bf16.mxu1 %v4960_v8  ;;  %v5393_v30 = vpack.c.bf16 %v499_v29, %v498_v28  ;;  %v5411_v38 = vrot.slane %v500_v37, %v609_v36  ;;  %v5418_v43 = vrot.slane %v500_v37, %v531_v42  ;;  %v506_v55 = vld [vmem:[#allocation16 + $0x8] sm:$0xff]  ;;  %v508_v58 = vld [vmem:[#allocation16 + $0x18] sm:$0xff]  ;;  %v501_v59 = vld [vmem:[#allocation14] sm:$0xff] }
 0x101   : > { %v5422_v57 = vpack.c.bf16 %v506_v55, %v505_v54  ;;  %v502_v60 = vld [vmem:[#allocation14 + $0x8] sm:$0xff]  ;;  %v503_v61 = vld [vmem:[#allocation14 + $0x10] sm:$0xff]  ;;  %v504_v62 = vld [vmem:[#allocation14 + $0x18] sm:$0xff]  ;;  %v5425_v63 = vpack.c.bf16 %v508_v58, %v507_v56 }
 0x102   : > { %v5427_v0 = vpack.c.bf16 %v502_v60, %v501_v59  ;;  %v5432_v18 = vpack.c.bf16 %v504_v62, %v503_v61  ;;  %v5436_v19 = vld [vmem:[#allocation2 + $0x2] sm:$0x3] }
 0x103   : > { %4278 = vmatpush3.bf16.msra.mxu1 %v5383_v23  ;;  %v3792_v29 = vld [vmem:[%s5874_s7 + $0x2] sm:$0x3] }
 0x104   : > { %4279 = vmatprep.subr.bf16.mxu1 %v4960_v8  ;;  %4287 = vmatpush3.bf16.msra.mxu0 %v5427_v0 }
 0x105   : > { %4288 = vmatprep.subr.bf16.mxu0 %v4960_v8 }
 0x106   : > { %3993 = vmatmul.mubr.msk.f32.vlgmr.msra.gmra.mrb[0].mxu1 %vm533_vm2, %v528_v26 }
 0x107   : > { %4281 = vmatpush3.bf16.msra.mxu1 %v5388_v27  ;;  %4003 = vmatprep.mubr.msk.f32.mxu1 %vm4961_vm1, %v4962_v9 }
 0x108   : > { %4282 = vmatprep.subr.bf16.mxu1 %v4960_v8  ;;  %4290 = vmatpush3.bf16.msra.mxu0 %v5432_v18 }
 0x109   : > { %4297 = vmatprep.subr.bf16.mxu0 %v4960_v8 }
 0x10b   : > { %4284 = vmatpush3.bf16.msra.mxu1 %v5393_v30 }
 0x10c   : > { %4291 = vmatprep.subr.bf16.mxu1 %v4960_v8 }
 0x10e   : > { %4004 = vmatmul.mubr.msk.f32.vlgmr.msra.gmra.mrb[2].mxu1 %vm533_vm2, %v525_v31 }
 0x10f   : > { %4025 = vmatprep.mubr.msk.f32.mxu1 %vm4961_vm1, %v4962_v9  ;;  %4293 = vmatpush3.bf16.msra.mxu1 %v5422_v57 }
 0x110   : > { %4294 = vmatprep.subr.bf16.mxu1 %v4960_v8 }
 0x113   : > { %4296 = vmatpush3.bf16.msra.mxu1 %v5425_v63 }
 0x114   : > { %4303 = vmatprep.subr.bf16.mxu1 %v4960_v8 }
 0x116   : > { %4026 = vmatmul.mubr.msk.f32.vlgmr.msra.gmra.mrb[4].mxu1 %vm533_vm2, %v5436_v19 }
 0x117   : > { %4305 = vmatpush3.bf16.msra.mxu1 %v5388_v27  ;;  %4047 = vmatprep.mubr.msk.f32.mxu1 %vm4961_vm1, %v4962_v9 }
 0x118   : > { %4306 = vmatprep.subr.bf16.mxu1 %v4960_v8 }
 0x11b   : > { %4308 = vmatpush3.bf16.msra.mxu1 %v5393_v30 }
 0x11c   : > { %4315 = vmatprep.subr.bf16.mxu1 %v4960_v8 }
 0x1d9   : > { %v603_v34 = vpop.f32.mrb[0].mxu1 }
 0x1da   : > { %v3994_v35 = vpop.f32.mrb[1].mxu1  ;;  %v604_v44 = vadd.f32 %v603_v34, %v5418_v43 }
 0x1e1   : > { %v680_v39 = vpop.f32.mrb[2].mxu1 }
 0x1e2   : > { %v681_v40 = vadd.f32 %v680_v39, %v5411_v38  ;;  %v4005_v41 = vpop.f32.mrb[3].mxu1  ;;  %v5487_v39 = vrot.slane %v3792_v29, %v531_v42 }
 0x1e4   : > { %692 = vrot.lane.b32.xlu0 %v681_v40, %s4963_s26  ;;  %v684_v45 = vadd.f32 %v681_v40, %v604_v44 }
 0x1e6   : > { %v3795_v46 = vmul.f32 -1.442695, %v684_v45 }
 0x1e8   : > { %4526 = vpow2.f32 %v3795_v46 }
 0x1e9   : > { %v865_v32 = vpop.f32.mrb[4].mxu1 }
 0x1ea   : > { %v4027_v35 = vpop.f32.mrb[5].mxu1 }
 0x1f2   : > { %v4527_v47 = vpop.eup %4526 }
 0x1f3   : > { %v688_v48 = vadd.f32 1.0, %v4527_v47 }
 0x1f5   : > { %4528 = vrcp.f32 %v688_v48 }
 0x1ff   : > { %v4529_v49 = vpop.eup %4528 }
 0x200   : > { %v702_v21 = vsub.f32 1.0, %v4529_v49 }
 0x256   : > { %v693_v50 = vpop.permute.xlu0 %692 }
 0x257   : > { %v695_v51 = vmul.f32 %v4529_v49, %v693_v50 }
 0x259   : > { %697 = vrot.lane.b32.xlu0 %v695_v51, %s4963_s26 }
 0x2cb   : > { %v698_v52 = vpop.permute.xlu0 %697 }
 0x2cc   : > { %v700_v53 = vadd.f32 %v698_v52, %v604_v44 }
 0x2ce   : > { %4530 = vtanh.f32 %v700_v53 }
 0x2d8   : > { %v4531_v1 = vpop.eup %4530 }
 0x2d9   : > { %704 = vrot.lane.b32.xlu1 %v4531_v1, %s4964_s12 }
 0x2dd   : > { %708 = vrot.lane.b32.xlu1 %v525_v31, %s5886_s21  ;;  %v5459_v31 = vrot.slane %v3792_v29, %v609_v36  ;;  %v3799_v36 = vld [vmem:[%s5320_s29 + $0x2] sm:$0x3] }
 0x2df   : > { %v866_v34 = vadd.f32 %v865_v32, %v5459_v31 }
 0x2e1   : > { %877 = vrot.lane.b32.xlu1 %v866_v34, %s4963_s26 }
 0x34b   : > { %v705_v20 = vpop.permute.xlu1 %704 }
 0x34c   : > { %v707_v25 = vmul.f32 %v705_v20, %v702_v21 }
 0x34f   : > { %v709_v24 = vpop.permute.xlu1 %708 }
 0x350   : > { %v711_v26 = vmul.f32 %v4529_v49, %v709_v24 }
 0x352   : > { %v5450_v28 = vadd.f32 %v711_v26, %v707_v25 }
 0x353   : > { %v878_v42 = vpop.permute.xlu1 %877 }
 0x354   : > { %718 = vrot.lane.b32.xlu0 %v5450_v28, %s4964_s12 }
 0x3c6   : > { %v719_v37 = vpop.permute.xlu0 %718 }
 0x3c7   : > { %4015 = vmatmul.mubr.msk.f32.vlgmr.msra.gmra.mrb[0].mxu0 %vm533_vm2, %v719_v37  ;;  %4048 = vmatmul.mubr.msk.f32.vlgmr.msra.gmra.mrb[6].mxu1 %vm533_vm2, %v719_v37 }
 0x3c8   : > { %4299 = vmatpush3.bf16.msra.mxu0 %v5380_v22  ;;  %4036 = vmatprep.mubr.msk.f32.mxu0 %vm4961_vm1, %v4962_v9 }
 0x3c9   : > { %4300 = vmatprep.subr.bf16.mxu0 %v4960_v8  ;;  %4317 = vmatpush3.bf16.msra.mxu1 %v5422_v57 }
 0x3ca   : > { %4318 = vmatprep.subr.bf16.mxu1 %v4960_v8  ;;  %4069 = vmatprep.mubr.msk.f32.mxu1 %vm4961_vm1, %v4962_v9 }
 0x3cc   : > { %4302 = vmatpush3.bf16.msra.mxu0 %v5383_v23 }
 0x3cd   : > { %4320 = vmatpush3.bf16.msra.mxu1 %v5425_v63  ;;  %4309 = vmatprep.subr.bf16.mxu0 %v4960_v8 }
 0x3ce   : > { %4327 = vmatprep.subr.bf16.mxu1 %v4960_v8 }
 0x3cf   : > { %4037 = vmatmul.mubr.msk.f32.vlgmr.msra.gmra.mrb[2].mxu0 %vm533_vm2, %v3799_v36 }
 0x3d0   : > { %4311 = vmatpush3.bf16.msra.mxu0 %v5427_v0  ;;  %4058 = vmatprep.mubr.msk.f32.mxu0 %vm4961_vm1, %v4962_v9 }
 0x3d1   : > { %4312 = vmatprep.subr.bf16.mxu0 %v4960_v8 }
 0x3d4   : > { %4314 = vmatpush3.bf16.msra.mxu0 %v5432_v18 }
 0x3d5   : > { %4321 = vmatprep.subr.bf16.mxu0 %v4960_v8 }
 0x49a   : > { %v788_v40 = vpop.f32.mrb[0].mxu0  ;;  %v1045_v41 = vpop.f32.mrb[6].mxu1 }
 0x49b   : > { %v789_v44 = vadd.f32 %v788_v40, %v5487_v39  ;;  %v1046_v45 = vadd.f32 %v1045_v41, %v5411_v38  ;;  %v4016_v46 = vpop.f32.mrb[1].mxu0  ;;  %v4049_v47 = vpop.f32.mrb[7].mxu1 }
 0x49d   : > { %v869_v48 = vadd.f32 %v866_v34, %v789_v44  ;;  %1057 = vrot.lane.b32.xlu0 %v1046_v45, %s4963_s26 }
 0x49f   : > { %v3798_v49 = vmul.f32 -1.442695, %v869_v48 }
 0x4a1   : > { %4532 = vpow2.f32 %v3798_v49  ;;  %v3806_v49 = vld [vmem:[%s5320_s29 + $0x4] sm:$0x3] }
 0x4a2   : > { %v975_v50 = vpop.f32.mrb[2].mxu0 }
 0x4a3   : > { %v4038_v51 = vpop.f32.mrb[3].mxu0  ;;  %v976_v56 = vadd.f32 %v975_v50, %v5418_v43 }
 0x4a5   : > { %v1049_v58 = vadd.f32 %v1046_v45, %v976_v56 }
 0x4a7   : > { %v3802_v59 = vmul.f32 -1.442695, %v1049_v58 }
 0x4ab   : > { %v4533_v52 = vpop.eup %4532 }
 0x4ac   : > { %v873_v53 = vadd.f32 1.0, %v4533_v52 }
 0x4ae   : > { %4534 = vrcp.f32 %v873_v53 }
 0x4af   : > { %4536 = vpow2.f32 %v3802_v59 }
 0x4b8   : > { %v4535_v54 = vpop.eup %4534 }
 0x4b9   : > { %v880_v55 = vmul.f32 %v4535_v54, %v878_v42  ;;  %v4537_v60 = vpop.eup %4536  ;;  %v887_v35 = vsub.f32 1.0, %v4535_v54 }
 0x4ba   : > { %v1053_v61 = vadd.f32 1.0, %v4537_v60 }
 0x4bb   : > { %882 = vrot.lane.b32.xlu1 %v880_v55, %s4963_s26 }
 0x4bc   : > { %4538 = vrcp.f32 %v1053_v61 }
 0x4c6   : > { %v4539_v62 = vpop.eup %4538 }
 0x4c7   : > { %v1073_v45 = vmul.f32 %v4539_v62, %v5450_v28 }
 0x50f   : > { %v1058_v1 = vpop.permute.xlu0 %1057 }
 0x510   : > { %v1060_v20 = vmul.f32 %v4539_v62, %v1058_v1 }
 0x512   : > { %1062 = vrot.lane.b32.xlu0 %v1060_v20, %s4963_s26 }
 0x516   : > { %893 = vrot.lane.b32.xlu0 %v5436_v19, %s5886_s21  ;;  %v1067_v19 = vsub.f32 1.0, %v4539_v62 }
 0x52d   : > { %v883_v21 = vpop.permute.xlu1 %882 }
 0x52e   : > { %v885_v24 = vadd.f32 %v883_v21, %v789_v44 }
 0x530   : > { %4540 = vtanh.f32 %v885_v24 }
 0x53a   : > { %v4541_v25 = vpop.eup %4540 }
 0x53b   : > { %889 = vrot.lane.b32.xlu1 %v4541_v25, %s4964_s12 }
 0x584   : > { %v1063_v26 = vpop.permute.xlu0 %1062 }
 0x585   : > { %v1065_v29 = vadd.f32 %v1063_v26, %v976_v56 }
 0x587   : > { %4542 = vtanh.f32 %v1065_v29 }
 0x588   : > { %v894_v34 = vpop.permute.xlu0 %893 }
 0x589   : > { %v896_v36 = vmul.f32 %v4535_v54, %v894_v34 }
 0x591   : > { %v4543_v32 = vpop.eup %4542 }
 0x592   : > { %1069 = vrot.lane.b32.xlu1 %v4543_v32, %s4964_s12 }
 0x5ad   : > { %v890_v37 = vpop.permute.xlu1 %889 }
 0x5ae   : > { %v892_v40 = vmul.f32 %v890_v37, %v887_v35 }
 0x5b0   : > { %v5499_v41 = vadd.f32 %v896_v36, %v892_v40 }
 0x5b2   : > { %899 = vrot.lane.b32.xlu0 %v5499_v41, %s4964_s12 }
 0x604   : > { %v1070_v44 = vpop.permute.xlu1 %1069 }
 0x605   : > { %v1072_v46 = vmul.f32 %v1070_v44, %v1067_v19 }
 0x607   : > { %v5504_v47 = vadd.f32 %v1073_v45, %v1072_v46 }
 0x609   : > { %1076 = vrot.lane.b32.xlu1 %v5504_v47, %s4964_s12 }
 0x624   : > { %v900_v48 = vpop.permute.xlu0 %899 }
 0x625   : > { %903 = vst.msk [vmem:[#allocation3] sm:$0x3] %vm902_vm3, %v900_v48  ;;  %4070 = vmatmul.mubr.msk.f32.vlgmr.msra.gmra.mrb[8].mxu1 %vm533_vm2, %v900_v48 }
 0x626   : > { %4329 = vmatpush3.bf16.msra.mxu1 %v5388_v27  ;;  %4091 = vmatprep.mubr.msk.f32.mxu1 %vm4961_vm1, %v4962_v9 }
 0x627   : > { %4330 = vmatprep.subr.bf16.mxu1 %v4960_v8 }
 0x62a   : > { %4332 = vmatpush3.bf16.msra.mxu1 %v5393_v30 }
 0x62b   : > { %4339 = vmatprep.subr.bf16.mxu1 %v4960_v8 }
 0x67b   : > { %v1077_v28 = vpop.permute.xlu1 %1076 }
 0x67c   : > { %4059 = vmatmul.mubr.msk.f32.vlgmr.msra.gmra.mrb[4].mxu0 %vm533_vm2, %v1077_v28  ;;  %4092 = vmatmul.mubr.msk.f32.vlgmr.msra.gmra.mrb[10].mxu1 %vm533_vm2, %v1077_v28 }
 0x67d   : > { %4323 = vmatpush3.bf16.msra.mxu0 %v5380_v22  ;;  %4080 = vmatprep.mubr.msk.f32.mxu0 %vm4961_vm1, %v4962_v9 }
 0x67e   : > { %4324 = vmatprep.subr.bf16.mxu0 %v4960_v8  ;;  %4341 = vmatpush3.bf16.msra.mxu1 %v5422_v57 }
 0x67f   : > { %4342 = vmatprep.subr.bf16.mxu1 %v4960_v8  ;;  %4113 = vmatprep.mubr.msk.f32.mxu1 %vm4961_vm1, %v4962_v9 }
 0x681   : > { %4326 = vmatpush3.bf16.msra.mxu0 %v5383_v23 }
 0x682   : > { %4344 = vmatpush3.bf16.msra.mxu1 %v5425_v63  ;;  %4333 = vmatprep.subr.bf16.mxu0 %v4960_v8 }
 0x683   : > { %4351 = vmatprep.subr.bf16.mxu1 %v4960_v8 }
 0x684   : > { %4081 = vmatmul.mubr.msk.f32.vlgmr.msra.gmra.mrb[6].mxu0 %vm533_vm2, %v3806_v49 }
 0x685   : > { %4335 = vmatpush3.bf16.msra.mxu0 %v5427_v0  ;;  %4102 = vmatprep.mubr.msk.f32.mxu0 %vm4961_vm1, %v4962_v9 }
 0x686   : > { %4336 = vmatprep.subr.bf16.mxu0 %v4960_v8 }
 0x689   : > { %4338 = vmatpush3.bf16.msra.mxu0 %v5432_v18 }
 0x68a   : > { %4345 = vmatprep.subr.bf16.mxu0 %v4960_v8 }
 0x6f8   : > { %v1218_v50 = vpop.f32.mrb[8].mxu1 }
 0x6f9   : > { %v1219_v51 = vadd.f32 %v1218_v50, %v5459_v31  ;;  %v4071_v52 = vpop.f32.mrb[9].mxu1 }
 0x6fb   : > { %1230 = vrot.lane.b32.xlu0 %v1219_v51, %s4963_s26 }
 0x74f   : > { %v1146_v53 = vpop.f32.mrb[4].mxu0  ;;  %v1395_v42 = vpop.f32.mrb[10].mxu1 }
 0x750   : > { %v1147_v54 = vadd.f32 %v1146_v53, %v5487_v39  ;;  %v1396_v55 = vadd.f32 %v1395_v42, %v5411_v38  ;;  %v4060_v56 = vpop.f32.mrb[5].mxu0  ;;  %v4093_v58 = vpop.f32.mrb[11].mxu1 }
 0x752   : > { %v1222_v59 = vadd.f32 %v1219_v51, %v1147_v54  ;;  %1407 = vrot.lane.b32.xlu1 %v1396_v55, %s4963_s26 }
 0x754   : > { %v3805_v60 = vmul.f32 -1.442695, %v1222_v59 }
 0x756   : > { %4544 = vpow2.f32 %v3805_v60 }
 0x757   : > { %v1325_v61 = vpop.f32.mrb[6].mxu0 }
 0x758   : > { %v4082_v62 = vpop.f32.mrb[7].mxu0  ;;  %v1326_v26 = vadd.f32 %v1325_v61, %v5418_v43 }
 0x75a   : > { %v1399_v29 = vadd.f32 %v1396_v55, %v1326_v26 }
 0x75c   : > { %v3809_v32 = vmul.f32 -1.442695, %v1399_v29 }
 0x760   : > { %v4545_v1 = vpop.eup %4544 }
 0x761   : > { %v1226_v20 = vadd.f32 1.0, %v4545_v1 }
 0x763   : > { %4546 = vrcp.f32 %v1226_v20 }
 0x764   : > { %4548 = vpow2.f32 %v3809_v32 }
 0x76d   : > { %v4547_v21 = vpop.eup %4546  ;;  %v1231_v24 = vpop.permute.xlu0 %1230 }
 0x76e   : > { %v1233_v25 = vmul.f32 %v4547_v21, %v1231_v24  ;;  %v4549_v34 = vpop.eup %4548  ;;  %v1240_v49 = vsub.f32 1.0, %v4547_v21  ;;  %v1246_v51 = vmul.f32 %v4547_v21, %v5499_v41 }
 0x76f   : > { %v1403_v35 = vadd.f32 1.0, %v4549_v34 }
 0x770   : > { %1235 = vrot.lane.b32.xlu0 %v1233_v25, %s4963_s26 }
 0x771   : > { %4550 = vrcp.f32 %v1403_v35 }
 0x77b   : > { %v4551_v37 = vpop.eup %4550 }
 0x77c   : > { %v1417_v42 = vsub.f32 1.0, %v4551_v37  ;;  %v1423_v55 = vmul.f32 %v4551_v37, %v5504_v47 }
 0x7c4   : > { %v1408_v36 = vpop.permute.xlu1 %1407 }
 0x7c5   : > { %v1410_v40 = vmul.f32 %v4551_v37, %v1408_v36 }
 0x7c7   : > { %1412 = vrot.lane.b32.xlu1 %v1410_v40, %s4963_s26 }
 0x7e2   : > { %v1236_v19 = vpop.permute.xlu0 %1235 }
 0x7e3   : > { %v1238_v44 = vadd.f32 %v1236_v19, %v1147_v54 }
 0x7e5   : > { %4552 = vtanh.f32 %v1238_v44 }
 0x7ef   : > { %v4553_v45 = vpop.eup %4552 }
 0x7f0   : > { %1242 = vrot.lane.b32.xlu0 %v4553_v45, %s4964_s12 }
 0x839   : > { %v1413_v46 = vpop.permute.xlu1 %1412 }
 0x83a   : > { %v1415_v48 = vadd.f32 %v1413_v46, %v1326_v26 }
 0x83c   : > { %4554 = vtanh.f32 %v1415_v48 }
 0x846   : > { %v4555_v28 = vpop.eup %4554 }
 0x847   : > { %1419 = vrot.lane.b32.xlu1 %v4555_v28, %s4964_s12 }
 0x862   : > { %v1243_v50 = vpop.permute.xlu0 %1242 }
 0x863   : > { %v1245_v52 = vmul.f32 %v1243_v50, %v1240_v49 }
 0x865   : > { %v5549_v53 = vadd.f32 %v1246_v51, %v1245_v52 }
 0x867   : > { %1249 = vrot.lane.b32.xlu0 %v5549_v53, %s4964_s12 }
 0x8b9   : > { %v1420_v54 = vpop.permute.xlu1 %1419 }
 0x8ba   : > { %v1422_v56 = vmul.f32 %v1420_v54, %v1417_v42 }
 0x8bc   : > { %v5554_v58 = vadd.f32 %v1423_v55, %v1422_v56 }
 0x8be   : > { %1426 = vrot.lane.b32.xlu1 %v5554_v58, %s4964_s12 }
 0x8d9   : > { %v1250_v59 = vpop.permute.xlu0 %1249 }
 0x8da   : > { %1253 = vst.msk [vmem:[#allocation3 + $0x2] sm:$0x3] %vm902_vm3, %v1250_v59  ;;  %4114 = vmatmul.mubr.msk.f32.vlgmr.msra.gmra.mrb[12].mxu1 %vm533_vm2, %v1250_v59 }
 0x8db   : > { %4353 = vmatpush3.bf16.msra.mxu1 %v5388_v27  ;;  %4135 = vmatprep.mubr.msk.f32.mxu1 %vm4961_vm1, %v4962_v9  ;;  %v3813_v27 = vld [vmem:[%s5320_s29 + $0x6] sm:$0x3] }
 0x8dc   : > { %4354 = vmatprep.subr.bf16.mxu1 %v4960_v8 }
 0x8df   : > { %4356 = vmatpush3.bf16.msra.mxu1 %v5393_v30 }
 0x8e0   : > { %4363 = vmatprep.subr.bf16.mxu1 %v4960_v8 }
 0x930   : > { %v1427_v41 = vpop.permute.xlu1 %1426 }
 0x931   : > { %4103 = vmatmul.mubr.msk.f32.vlgmr.msra.gmra.mrb[8].mxu0 %vm533_vm2, %v1427_v41  ;;  %4136 = vmatmul.mubr.msk.f32.vlgmr.msra.gmra.mrb[14].mxu1 %vm533_vm2, %v1427_v41 }
 0x932   : > { %4347 = vmatpush3.bf16.msra.mxu0 %v5380_v22  ;;  %4124 = vmatprep.mubr.msk.f32.mxu0 %vm4961_vm1, %v4962_v9 }
 0x933   : > { %4348 = vmatprep.subr.bf16.mxu0 %v4960_v8  ;;  %4365 = vmatpush3.bf16.msra.mxu1 %v5422_v57 }
 0x934   : > { %4366 = vmatprep.subr.bf16.mxu1 %v4960_v8  ;;  %4157 = vmatprep.mubr.msk.f32.mxu1 %vm4961_vm1, %v4962_v9 }
 0x936   : > { %4350 = vmatpush3.bf16.msra.mxu0 %v5383_v23 }
 0x937   : > { %4368 = vmatpush3.bf16.msra.mxu1 %v5425_v63  ;;  %4357 = vmatprep.subr.bf16.mxu0 %v4960_v8 }
 0x939   : > { %4125 = vmatmul.mubr.msk.f32.vlgmr.msra.gmra.mrb[10].mxu0 %vm533_vm2, %v3813_v27 }
 0x93a   : > { %4359 = vmatpush3.bf16.msra.mxu0 %v5427_v0  ;;  %4146 = vmatprep.mubr.msk.f32.mxu0 %vm4961_vm1, %v4962_v9 }
 0x93b   : > { %4360 = vmatprep.subr.bf16.mxu0 %v4960_v8 }
 0x93e   : > { %4362 = vmatpush3.bf16.msra.mxu0 %v5432_v18 }
 0x9ad   : > { %v1568_v22 = vpop.f32.mrb[12].mxu1 }
 0x9ae   : > { %v1569_v30 = vadd.f32 %v1568_v22, %v5459_v31  ;;  %v4115_v23 = vpop.f32.mrb[13].mxu1 }
 0x9b0   : > { %1580 = vrot.lane.b32.xlu0 %v1569_v30, %s4963_s26 }
 0xa04   : > { %v1496_v57 = vpop.f32.mrb[8].mxu0  ;;  %v1745_v63 = vpop.f32.mrb[14].mxu1 }
 0xa05   : > { %v1497_v47 = vadd.f32 %v1496_v57, %v5487_v39  ;;  %v1746_v60 = vadd.f32 %v1745_v63, %v5411_v38  ;;  %v4104_v0 = vpop.f32.mrb[9].mxu0  ;;  %v4137_v61 = vpop.f32.mrb[15].mxu1 }
 0xa07   : > { %v1572_v62 = vadd.f32 %v1569_v30, %v1497_v47  ;;  %1757 = vrot.lane.b32.xlu1 %v1746_v60, %s4963_s26 }
 0xa09   : > { %v3812_v1 = vmul.f32 -1.442695, %v1572_v62 }
 0xa0b   : > { %4556 = vpow2.f32 %v3812_v1 }
 0xa0c   : > { %v1675_v18 = vpop.f32.mrb[10].mxu0 }
 0xa0d   : > { %v4126_v20 = vpop.f32.mrb[11].mxu0  ;;  %v1676_v32 = vadd.f32 %v1675_v18, %v5418_v43 }
 0xa0f   : > { %v1749_v38 = vadd.f32 %v1746_v60, %v1676_v32 }
 0xa11   : > { %v3816_v34 = vmul.f32 -1.442695, %v1749_v38 }
 0xa15   : > { %v4557_v21 = vpop.eup %4556 }
 0xa16   : > { %v1576_v24 = vadd.f32 1.0, %v4557_v21 }
 0xa18   : > { %4558 = vrcp.f32 %v1576_v24 }
 0xa19   : > { %4560 = vpow2.f32 %v3816_v34 }
 0xa22   : > { %v4559_v25 = vpop.eup %4558  ;;  %v1581_v26 = vpop.permute.xlu0 %1580 }
 0xa23   : > { %v1583_v29 = vmul.f32 %v4559_v25, %v1581_v26  ;;  %v4561_v35 = vpop.eup %4560  ;;  %v1590_v49 = vsub.f32 1.0, %v4559_v25  ;;  %v1596_v51 = vmul.f32 %v4559_v25, %v5549_v53 }
 0xa24   : > { %v1753_v37 = vadd.f32 1.0, %v4561_v35 }
 0xa25   : > { %1585 = vrot.lane.b32.xlu0 %v1583_v29, %s4963_s26 }
 0xa26   : > { %4562 = vrcp.f32 %v1753_v37 }
 0xa30   : > { %v4563_v36 = vpop.eup %4562 }
 0xa31   : > { %v1767_v54 = vsub.f32 1.0, %v4563_v36  ;;  %v1773_v56 = vmul.f32 %v4563_v36, %v5554_v58 }
 0xa79   : > { %v1758_v40 = vpop.permute.xlu1 %1757 }
 0xa7a   : > { %v1760_v19 = vmul.f32 %v4563_v36, %v1758_v40 }
 0xa7c   : > { %1762 = vrot.lane.b32.xlu1 %v1760_v19, %s4963_s26 }
 0xa97   : > { %v1586_v44 = vpop.permute.xlu0 %1585 }
 0xa98   : > { %v1588_v45 = vadd.f32 %v1586_v44, %v1497_v47 }
 0xa9a   : > { %4564 = vtanh.f32 %v1588_v45 }
 0xaa4   : > { %v4565_v46 = vpop.eup %4564 }
 0xaa5   : > { %1592 = vrot.lane.b32.xlu0 %v4565_v46, %s4964_s12 }
 0xaee   : > { %v1763_v48 = vpop.permute.xlu1 %1762 }
 0xaef   : > { %v1765_v28 = vadd.f32 %v1763_v48, %v1676_v32 }
 0xaf1   : > { %4566 = vtanh.f32 %v1765_v28 }
 0xafb   : > { %v4567_v43 = vpop.eup %4566 }
 0xafc   : > { %1769 = vrot.lane.b32.xlu1 %v4567_v43, %s4964_s12 }
 0xb17   : > { %v1593_v50 = vpop.permute.xlu0 %1592 }
 0xb18   : > { %v1595_v52 = vmul.f32 %v1593_v50, %v1590_v49 }
 0xb1a   : > { %v1597_v42 = vadd.f32 %v1596_v51, %v1595_v52 }
 0xb1c   : > { %1599 = vrot.lane.b32.xlu0 %v1597_v42, %s4964_s12 }
 0xb6e   : > { %v1770_v55 = vpop.permute.xlu1 %1769 }
 0xb6f   : > { %v1772_v59 = vmul.f32 %v1770_v55, %v1767_v54 }
 0xb71   : > { %v1774_v41 = vadd.f32 %v1773_v56, %v1772_v59 }
 0xb73   : > { %1776 = vrot.lane.b32.xlu1 %v1774_v41, %s4964_s12 }
 0xb8e   : > { %v1600_v27 = vpop.permute.xlu0 %1599 }
 0xb8f   : > { %1603 = vst.msk [vmem:[#allocation3 + $0x4] sm:$0x3] %vm902_vm3, %v1600_v27  ;;  %4158 = vmatmul.mubr.msk.f32.vlgmr.msra.gmra.mrb[16].mxu1 %vm533_vm2, %v1600_v27 }
 0xbe5   : > { %v1777_v22 = vpop.permute.xlu1 %1776 }
 0xbe6   : > { %1955 = vst.msk [vmem:[#allocation2] sm:$0x3] %vm902_vm3, %v1777_v22  ;;  %4147 = vmatmul.mubr.msk.f32.vlgmr.msra.gmra.mrb[12].mxu0 %vm533_vm2, %v1777_v22 }
 0xbed   : > { %v1961_v38 = vld [vmem:[#allocation2] sm:$0x3] (!%p3820_p1) }
 0xbee   : > { %1963 = vst.msk [vmem:[#allocation20] sm:$0x3] (!%p3820_p1), %vm902_vm3, %v1961_v38 }
 0xc62   : > { %v1918_v53 = vpop.f32.mrb[16].mxu1 }
 0xc63   : > { %v1919_v30 = vadd.f32 %v1918_v53, %v5459_v31  ;;  %v4159_v23 = vpop.f32.mrb[17].mxu1 }
 0xc65   : > { %1930 = vrot.lane.b32.xlu0 %v1919_v30, %s4963_s26 }
 0xcb9   : > { %v1846_v58 = vpop.f32.mrb[12].mxu0 }
 0xcba   : > { %v1847_v57 = vadd.f32 %v1846_v58, %v5487_v39  ;;  %v4148_v63 = vpop.f32.mrb[13].mxu0 }
 0xcbc   : > { %v1922_v47 = vadd.f32 %v1919_v30, %v1847_v57 }
 0xcbe   : > { %v3819_v60 = vmul.f32 -1.442695, %v1922_v47 }
 0xcc0   : > { %4568 = vpow2.f32 %v3819_v60 }
 0xcca   : > { %v4569_v0 = vpop.eup %4568 }
 0xccb   : > { %v1926_v61 = vadd.f32 1.0, %v4569_v0 }
 0xccd   : > { %4570 = vrcp.f32 %v1926_v61 }
 0xcd7   : > { %v4571_v62 = vpop.eup %4570  ;;  %v1931_v1 = vpop.permute.xlu0 %1930 }
 0xcd8   : > { %v1933_v18 = vmul.f32 %v4571_v62, %v1931_v1  ;;  %v1940_v24 = vsub.f32 1.0, %v4571_v62  ;;  %v1946_v25 = vmul.f32 %v4571_v62, %v1597_v42 }
 0xcda   : > { %1935 = vrot.lane.b32.xlu1 %v1933_v18, %s4963_s26 }
 0xd4c   : > { %v1936_v20 = vpop.permute.xlu1 %1935 }
 0xd4d   : > { %v1938_v31 = vadd.f32 %v1936_v20, %v1847_v57 }
 0xd4f   : > { %4572 = vtanh.f32 %v1938_v31 }
 0xd59   : > { %v4573_v21 = vpop.eup %4572 }
 0xd5a   : > { %1942 = vrot.lane.b32.xlu0 %v4573_v21, %s4964_s12 }
 0xdcc   : > { %v1943_v39 = vpop.permute.xlu0 %1942 }
 0xdcd   : > { %v1945_v26 = vmul.f32 %v1943_v39, %v1940_v24 }
 0xdcf   : > { %v1947_v29 = vadd.f32 %v1946_v25, %v1945_v26 }
 0xdd1   : > { %1949 = vrot.lane.b32.xlu1 %v1947_v29, %s4964_s12 }
 0xe3e   : > { %1960 = sbr.rel (%p3820_p1) target bundleno = 3661 (0xe4d), region = 96 }
 0xe43   : > { %v1950_v32 = vpop.permute.xlu1 %1949 }
 0xe44   : > { %1953 = vst.msk [vmem:[#allocation3 + $0x6] sm:$0x3] %vm902_vm3, %v1950_v32  ;;  %1956 = vst.msk [vmem:[#allocation2 + $0x2] sm:$0x3] %vm902_vm3, %v1950_v32 }
 0xe4b   : > { %v1962_v34 = vld [vmem:[#allocation2 + $0x2] sm:$0x3] }
 0xe4c   : > { %1964 = vst.msk [vmem:[#allocation20 + $0x2] sm:$0x3] %vm902_vm3, %v1962_v34 }
 0xe4d PF: > { %4369 = vmatprep.subr.bf16.mxu0 %v4960_v8  ;;  %v4370_v35 = vpack.c.bf16 %v5352_v5, %v5350_v4  ;;  %4168 = vmatprep.mubr.msk.f32.mxu0 %vm4961_vm1, %v4962_v9  ;;  %v1965_v37 = vld [vmem:[#allocation3] sm:$0x3]  ;;  %v1966_v36 = vld [vmem:[#allocation3 + $0x2] sm:$0x3]  ;;  %v1967_v40 = vld [vmem:[#allocation3 + $0x4] sm:$0x3]  ;;  %v4373_v44 = vpack.c.bf16 %v5356_v7, %v5354_v6 }
 0xe4e   : > { %4171 = vmatprep.subr.mxu1 %v4962_v9  ;;  %4173 = vmatprep.mubr.msk.f32.mxu1 %vm4961_vm1, %v4962_v9  ;;  %v4966_v45 = vmov 1983009808   ;;  %v1973_v4 = vcombine.low %v1965_v37, %v1966_v36  ;;  %v4967_v49 = vmov 1966171168   ;;  %vm2238_vm4 = vcmask 57344   ;;  %s4968_s25 = smov [#allocation20]  }
 0xe4f   : > { %4371 = vmatpush3.bf16.msra.mxu0 %v4370_v35  ;;  %v1976_v46 = vunpack.c.l.s4 %v4966_v45  ;;  %4172 = vmatpush3.xpose.msk.msra.mxu1 %vm533_vm2, %v5346_v2  ;;  %v2081_v50 = vunpack.c.l.s4 %v4967_v49  ;;  %vm2261_vm5 = vcmask 64512   ;;  %vm2411_vm6 = vcmask 1041409   ;;  %s3617_s22 = sshll.u32 %s4968_s25, 4  ;;  %p5912_p13 = scmp.eq.s32.totalorder %s5047_s19, 1  ;;  %s3618_s22 = int_to_ptr.vmem [resolvable:$true] %s3617_s22 }
 0xe50   : > { %4372 = vmatprep.subr.bf16.mxu0 %v4960_v8  ;;  %4176 = vmatprep.subr.mxu1 %v4962_v9  ;;  %s4834_s10 = scalar_lea.vmem %s3618_s22, 64  ;;  %p4841_p7 = scmp.lt.s32.totalorder %s3618_s22, %s3618_s22 }
 0xe51   : > { %v1977_v48 = vunpack.c.0.s8 %v1976_v46  ;;  %v2082_v51 = vunpack.c.0.s8 %v2081_v50  ;;  %p4835_p11 = scmp.ne.s32.totalorder %s3618_s22, %s4834_s10  ;;  %p4842_p10 = scmp.lt.s32.totalorder %s4834_s10, %s4834_s10 }
 0xe53   : > { %v1968_v19 = vld [vmem:[#allocation3 + $0x6] sm:$0x3]  ;;  %4374 = vmatpush3.bf16.msra.mxu0 %v4373_v44  ;;  %v5630_v28 = vsub.s32 %v1977_v48, %v5403_v33  ;;  %v2085_v52 = vsub.s32 %v2082_v51, %v5403_v33  ;;  %p4836_p0 = pnand %p4835_p11, %p5912_p13  ;;  %p4843_p3 = por %p4842_p10, %p4841_p7 }
 0xe54   : > { %v1974_v5 = vcombine.low %v1967_v40, %v1968_v19  ;;  %4181 = vmatprep.subr.mxu0 %v4962_v9 }
 0xe55   : > { %v1981_v6 = vrot.slane %v1973_v4, %v5630_v28  ;;  %p4837_p12 = pneg %p4836_p0 }
 0xe56   : > { %v1988_v7 = vrot.slane %v1974_v5, %v5630_v28 }
 0xe57   : > { %p4844_p9 = pnand %p4843_p3, %p4837_p12 }
 0xe58   : > { %v5635_v43 = vcombine.low %v1981_v6, %v1988_v7 }
 0xe5a   : > { %4169 = vmatmul.mubr.msk.f32.vlgmr.msra.gmra.mrb[14].mxu0 %vm533_vm2, %v5635_v43 }
 0xe5b   : > { %4182 = vmatpush3.msra.mxu0 %v5346_v2  ;;  %4183 = vmatprep.mubr.msk.f32.mxu0 %vm4961_vm1, %v4962_v9 }
 0xe5c   : > { %4191 = vmatprep.subr.mxu0 %v4962_v9 }
 0xf2d   : > { %v2058_v42 = vpop.f32.mrb[14].mxu0 }
 0xf2e   : > { %v2063_v54 = vcombine.high %v2058_v42, %v2058_v42  ;;  %v2070_v55 = vrot.slane %v2058_v42, %v5630_v28  ;;  %v4170_v56 = vpop.f32.mrb[15].mxu0 }
 0xf30   : > { %v2077_v59 = vrot.slane %v2063_v54, %v5630_v28  ;;  %v2078_v41 = vcombine.high %v2070_v55, %v2070_v55  ;;  %v2086_v27 = vrot.slane %v2070_v55, %v2085_v52 }
 0xf32   : > { %v2079_v22 = vcombine.high %v2077_v59, %v2077_v59  ;;  %v2421_v53 = vrot.slane %v2078_v41, %v2085_v52  ;;  %v5646_v30 = vrot.slane %v2077_v59, %v2085_v52  ;;  %4174 = vmatmul.mubr.msk.f32.vlgmr.msra.gmra.mrb[18].mxu1 %vm533_vm2, %v2086_v27  ;;  %v2087_v33 = vcombine.high %v2086_v27, %v2086_v27 }
 0xf33   : > { %4177 = vmatpush3.xpose.msk.msra.mxu1 %vm533_vm2, %v5348_v3  ;;  %4178 = vmatprep.mubr.msk.f32.mxu1 %vm4961_vm1, %v4962_v9 }
 0xf34   : > { %v5653_v23 = vrot.slane %v2079_v22, %v2085_v52  ;;  %4186 = vmatprep.subr.mxu1 %v4962_v9  ;;  %v2422_v37 = vcombine.high %v2421_v53, %v2421_v53 }
 0xf36   : > { %4179 = vmatmul.mubr.msk.f32.vlgmr.msra.gmra.mrb[20].mxu1 %vm533_vm2, %v2087_v33 }
 0xf37   : > { %4187 = vmatpush3.msra.mxu1 %v5348_v3  ;;  %4188 = vmatprep.mubr.msk.f32.mxu1 %vm4961_vm1, %v4962_v9 }
 0xf38   : > { %4196 = vmatprep.subr.mxu1 %v4962_v9 }
0x1005   : > { %v2159_v58 = vpop.f32.mrb[18].mxu1 }
0x1006   : > { %v4175_v57 = vpop.f32.mrb[19].mxu1  ;;  %v2239_v0 = vsel %vm2238_vm4, %v2159_v58, -inf }
0x1009   : > { %v2234_v63 = vpop.f32.mrb[20].mxu1 }
0x100a   : > { %v4180_v47 = vpop.f32.mrb[21].mxu1  ;;  %v2242_v60 = vsel %vm2238_vm4, %v2234_v63, -inf }
0x100b   : > { %2243 = vmax.xlane.f32.xlu0 %v2242_v60  ;;  %v2749_v47 = vcombine.high %v5646_v30, %v5646_v30 }
0x100f   : > { %2240 = vmax.xlane.f32.xlu0 %v2239_v0 }
0x1098   : > { %v2244_v61 = vpop.xlane.xlu0 %2243 }
0x1099   : > { %v2246_v62 = vsub.f32 %v2234_v63, %v2244_v61 }
0x109b   : > { %v2249_v1 = vmul.f32 1.442695, %v2246_v62 }
0x109c   : > { %v2241_v18 = vpop.xlane.xlu0 %2240 }
0x109d   : > { %4574 = vpow2.f32 %v2249_v1  ;;  %v2245_v20 = vsub.f32 %v2159_v58, %v2241_v18 }
0x109f   : > { %v2247_v31 = vmul.f32 1.442695, %v2245_v20 }
0x10a1   : > { %4576 = vpow2.f32 %v2247_v31 }
0x10a7   : > { %v4575_v21 = vpop.eup %4574 }
0x10a8   : > { %v2254_v24 = vsel %vm2238_vm4, %v4575_v21, 0.0 }
0x10a9   : > { %2255 = vadd.xlane.f32.xlu1 %v2254_v24 }
0x10ab   : > { %v4577_v39 = vpop.eup %4576 }
0x10ac   : > { %v2251_v25 = vsel %vm2238_vm4, %v4577_v39, 0.0 }
0x10ad   : > { %2252 = vadd.xlane.f32.xlu1 %v2251_v25 }
0x1136   : > { %v2256_v26 = vpop.xlane.xlu1 %2255 }
0x1137   : > { %4578 = vrcp.f32 %v2256_v26 }
0x113a   : > { %v2253_v29 = vpop.xlane.xlu1 %2252 }
0x113b   : > { %4580 = vrcp.f32 %v2253_v29 }
0x1141   : > { %v4579_v32 = vpop.eup %4578 }
0x1142   : > { %v2260_v38 = vmul.f32 %v4579_v32, %v4575_v21 }
0x1144   : > { %4189 = vmatmul.mubr.msk.f32.vlgmr.msra.gmra.mrb[22].mxu1 %vm2261_vm5, %v2260_v38 }
0x1145   : > { %v4581_v34 = vpop.eup %4580  ;;  %4197 = vmatpush3.xpose.msk.msra.mxu1 %vm533_vm2, %v5348_v3  ;;  %4198 = vmatprep.mubr.msk.f32.mxu1 %vm4961_vm1, %v4962_v9 }
0x1146   : > { %v2259_v35 = vmul.f32 %v4581_v34, %v4577_v39  ;;  %4206 = vmatprep.subr.mxu1 %v4962_v9 }
0x1148   : > { %4184 = vmatmul.mubr.msk.f32.vlgmr.msra.gmra.mrb[16].mxu0 %vm2261_vm5, %v2259_v35  ;;  %4199 = vmatmul.mubr.msk.f32.vlgmr.msra.gmra.mrb[24].mxu1 %vm533_vm2, %v2422_v37 }
0x1149   : > { %4192 = vmatpush3.xpose.msk.msra.mxu0 %vm533_vm2, %v5346_v2  ;;  %4193 = vmatprep.mubr.msk.f32.mxu0 %vm4961_vm1, %v4962_v9 }
0x114a   : > { %4207 = vmatpush3.msra.mxu1 %v5348_v3  ;;  %4201 = vmatprep.subr.mxu0 %v4962_v9 }
0x114b   : > { %4208 = vmatprep.mubr.msk.f32.mxu1 %vm4961_vm1, %v4962_v9  ;;  %4216 = vmatprep.subr.mxu1 %v4962_v9 }
0x114c   : > { %4194 = vmatmul.mubr.msk.f32.vlgmr.msra.gmra.mrb[18].mxu0 %vm533_vm2, %v2421_v53 }
0x114d   : > { %4202 = vmatpush3.msra.mxu0 %v5346_v2  ;;  %4203 = vmatprep.mubr.msk.f32.mxu0 %vm4961_vm1, %v4962_v9 }
0x114e   : > { %4211 = vmatprep.subr.mxu0 %v4962_v9 }
0x1217   : > { %v2404_v36 = vpop.f32.mrb[22].mxu1 }
0x1218   : > { %v4190_v40 = vpop.f32.mrb[23].mxu1  ;;  %v2410_v19 = vrot.slane %v2404_v36, 7 }
0x121b   : > { %v2331_v44 = vpop.f32.mrb[16].mxu0  ;;  %v2563_v45 = vpop.f32.mrb[24].mxu1 }
0x121c   : > { %v2412_v46 = vsel %vm2411_vm6, %v2410_v19, %v2331_v44  ;;  %v4185_v4 = vpop.f32.mrb[17].mxu0  ;;  %v4200_v5 = vpop.f32.mrb[25].mxu1  ;;  %v2570_v48 = vsel %vm2238_vm4, %v2563_v45, -inf }
0x121d   : > { %2414 = vst.msk [vmem:[#allocation4] sm:$0x3] %vm902_vm3, %v2412_v46  ;;  %2571 = vmax.xlane.f32.xlu0 %v2570_v48  ;;  %v3076_v48 = vcombine.high %v5653_v23, %v5653_v23 }
0x121f   : > { %v2491_v6 = vpop.f32.mrb[18].mxu0 }
0x1220   : > { %v4195_v7 = vpop.f32.mrb[19].mxu0  ;;  %v2567_v49 = vsel %vm2238_vm4, %v2491_v6, -inf }
0x1221   : > { %2568 = vmax.xlane.f32.xlu1 %v2567_v49 }
0x12aa   : > { %v2572_v50 = vpop.xlane.xlu0 %2571 }
0x12ab   : > { %v2574_v51 = vsub.f32 %v2563_v45, %v2572_v50 }
0x12ad   : > { %v2577_v52 = vmul.f32 1.442695, %v2574_v51 }
0x12ae   : > { %v2569_v42 = vpop.xlane.xlu1 %2568 }
0x12af   : > { %4582 = vpow2.f32 %v2577_v52  ;;  %v2573_v54 = vsub.f32 %v2491_v6, %v2569_v42 }
0x12b1   : > { %v2575_v55 = vmul.f32 1.442695, %v2573_v54 }
0x12b3   : > { %4584 = vpow2.f32 %v2575_v55 }
0x12b9   : > { %v4583_v56 = vpop.eup %4582 }
0x12ba   : > { %v2582_v59 = vsel %vm2238_vm4, %v4583_v56, 0.0 }
0x12bb   : > { %2583 = vadd.xlane.f32.xlu0 %v2582_v59 }
0x12bd   : > { %v4585_v41 = vpop.eup %4584 }
0x12be   : > { %v2579_v27 = vsel %vm2238_vm4, %v4585_v41, 0.0 }
0x12bf   : > { %2580 = vadd.xlane.f32.xlu1 %v2579_v27 }
0x1348   : > { %v2584_v22 = vpop.xlane.xlu0 %2583 }
0x1349   : > { %4586 = vrcp.f32 %v2584_v22 }
0x134c   : > { %v2581_v53 = vpop.xlane.xlu1 %2580 }
0x134d   : > { %4588 = vrcp.f32 %v2581_v53 }
0x1353   : > { %v4587_v33 = vpop.eup %4586 }
0x1354   : > { %v2588_v58 = vmul.f32 %v4587_v33, %v4583_v56 }
0x1356   : > { %4209 = vmatmul.mubr.msk.f32.vlgmr.msra.gmra.mrb[26].mxu1 %vm2261_vm5, %v2588_v58 }
0x1357   : > { %v4589_v57 = vpop.eup %4588  ;;  %4217 = vmatpush3.xpose.msk.msra.mxu1 %vm533_vm2, %v5348_v3  ;;  %4218 = vmatprep.mubr.msk.f32.mxu1 %vm4961_vm1, %v4962_v9 }
0x1358   : > { %v2587_v63 = vmul.f32 %v4589_v57, %v4585_v41  ;;  %4226 = vmatprep.subr.mxu1 %v4962_v9 }
0x135a   : > { %4204 = vmatmul.mubr.msk.f32.vlgmr.msra.gmra.mrb[20].mxu0 %vm2261_vm5, %v2587_v63  ;;  %4219 = vmatmul.mubr.msk.f32.vlgmr.msra.gmra.mrb[28].mxu1 %vm533_vm2, %v2749_v47 }
0x135b   : > { %4212 = vmatpush3.xpose.msk.msra.mxu0 %vm533_vm2, %v5346_v2  ;;  %4213 = vmatprep.mubr.msk.f32.mxu0 %vm4961_vm1, %v4962_v9 }
0x135c   : > { %4227 = vmatpush3.msra.mxu1 %v5348_v3  ;;  %4221 = vmatprep.subr.mxu0 %v4962_v9 }
0x135d   : > { %4228 = vmatprep.mubr.msk.f32.mxu1 %vm4961_vm1, %v4962_v9  ;;  %4236 = vmatprep.subr.mxu1 %v4962_v9 }
0x135e   : > { %4214 = vmatmul.mubr.msk.f32.vlgmr.msra.gmra.mrb[22].mxu0 %vm533_vm2, %v5646_v30 }
0x135f   : > { %4222 = vmatpush3.msra.mxu0 %v5346_v2  ;;  %4223 = vmatprep.mubr.msk.f32.mxu0 %vm4961_vm1, %v4962_v9 }
0x1360   : > { %4231 = vmatprep.subr.mxu0 %v4962_v9 }
0x1429   : > { %v2731_v60 = vpop.f32.mrb[26].mxu1 }
0x142a   : > { %v4210_v0 = vpop.f32.mrb[27].mxu1  ;;  %v2737_v61 = vrot.slane %v2731_v60, 7 }
0x142d   : > { %v2658_v62 = vpop.f32.mrb[20].mxu0  ;;  %v2890_v1 = vpop.f32.mrb[28].mxu1 }
0x142e   : > { %v2738_v18 = vsel %vm2411_vm6, %v2737_v61, %v2658_v62  ;;  %v4205_v20 = vpop.f32.mrb[21].mxu0  ;;  %v4220_v31 = vpop.f32.mrb[29].mxu1  ;;  %v2897_v21 = vsel %vm2238_vm4, %v2890_v1, -inf }
0x142f   : > { %2741 = vst.msk [vmem:[#allocation4 + $0x2] sm:$0x3] %vm902_vm3, %v2738_v18  ;;  %2898 = vmax.xlane.f32.xlu0 %v2897_v21  ;;  %v4376_v18 = vpack.c.bf16 %v5374_v15, %v5372_v14  ;;  %v4379_v20 = vpack.c.bf16 %v5378_v17, %v5376_v16  ;;  %v4382_v31 = vpack.c.bf16 %v5363_v11, %v5361_v10 }
0x1430   : > { %v4385_v21 = vpack.c.bf16 %v5370_v13, %v5365_v12 }
0x1431   : > { %v2818_v30 = vpop.f32.mrb[22].mxu0 }
0x1432   : > { %v4215_v24 = vpop.f32.mrb[23].mxu0  ;;  %v2894_v39 = vsel %vm2238_vm4, %v2818_v30, -inf }
0x1433   : > { %2895 = vmax.xlane.f32.xlu1 %v2894_v39 }
0x14bc   : > { %v2899_v25 = vpop.xlane.xlu0 %2898 }
0x14bd   : > { %v2901_v26 = vsub.f32 %v2890_v1, %v2899_v25 }
0x14bf   : > { %v2904_v29 = vmul.f32 1.442695, %v2901_v26 }
0x14c0   : > { %v2896_v32 = vpop.xlane.xlu1 %2895 }
0x14c1   : > { %4590 = vpow2.f32 %v2904_v29  ;;  %v2900_v38 = vsub.f32 %v2818_v30, %v2896_v32  ;;  %v3396_v30 = vld [vmem:[#allocation4] sm:$0x3] }
0x14c3   : > { %v2902_v34 = vmul.f32 1.442695, %v2900_v38 }
0x14c5   : > { %4592 = vpow2.f32 %v2902_v34 }
0x14cb   : > { %v4591_v35 = vpop.eup %4590 }
0x14cc   : > { %v2909_v37 = vsel %vm2238_vm4, %v4591_v35, 0.0 }
0x14cd   : > { %2910 = vadd.xlane.f32.xlu0 %v2909_v37 }
0x14cf   : > { %v4593_v36 = vpop.eup %4592 }
0x14d0   : > { %v2906_v40 = vsel %vm2238_vm4, %v4593_v36, 0.0 }
0x14d1   : > { %2907 = vadd.xlane.f32.xlu1 %v2906_v40 }
0x155a   : > { %v2911_v19 = vpop.xlane.xlu0 %2910 }
0x155b   : > { %4594 = vrcp.f32 %v2911_v19 }
0x155e   : > { %v2908_v44 = vpop.xlane.xlu1 %2907 }
0x155f   : > { %4596 = vrcp.f32 %v2908_v44 }
0x1565   : > { %v4595_v45 = vpop.eup %4594 }
0x1566   : > { %v2915_v46 = vmul.f32 %v4595_v45, %v4591_v35 }
0x1568   : > { %4229 = vmatmul.mubr.msk.f32.vlgmr.msra.gmra.mrb[30].mxu1 %vm2261_vm5, %v2915_v46 }
0x1569   : > { %v4597_v4 = vpop.eup %4596  ;;  %4237 = vmatpush3.xpose.msk.msra.mxu1 %vm533_vm2, %v5348_v3  ;;  %4238 = vmatprep.mubr.msk.f32.mxu1 %vm4961_vm1, %v4962_v9 }
0x156a   : > { %v2914_v5 = vmul.f32 %v4597_v4, %v4593_v36  ;;  %4246 = vmatprep.subr.mxu1 %v4962_v9 }
0x156c   : > { %4224 = vmatmul.mubr.msk.f32.vlgmr.msra.gmra.mrb[24].mxu0 %vm2261_vm5, %v2914_v5  ;;  %4239 = vmatmul.mubr.msk.f32.vlgmr.msra.gmra.mrb[32].mxu1 %vm533_vm2, %v3076_v48 }
0x156d   : > { %4232 = vmatpush3.xpose.msk.msra.mxu0 %vm533_vm2, %v5346_v2  ;;  %4233 = vmatprep.mubr.msk.f32.mxu0 %vm4961_vm1, %v4962_v9 }
0x156e   : > { %4247 = vmatpush3.msra.mxu1 %v5348_v3  ;;  %4241 = vmatprep.subr.mxu0 %v4962_v9 }
0x156f   : > { %4248 = vmatprep.mubr.msk.f32.mxu1 %vm4961_vm1, %v4962_v9 }
0x1570   : > { %4234 = vmatmul.mubr.msk.f32.vlgmr.msra.gmra.mrb[26].mxu0 %vm533_vm2, %v5653_v23 }
0x1571   : > { %4242 = vmatpush3.msra.mxu0 %v5346_v2  ;;  %4243 = vmatprep.mubr.msk.f32.mxu0 %vm4961_vm1, %v4962_v9 }
0x1572   : > { %4375 = vmatprep.subr.bf16.mxu0 %v4960_v8 }
0x163b   : > { %v3058_v6 = vpop.f32.mrb[30].mxu1 }
0x163c   : > { %v4230_v7 = vpop.f32.mrb[31].mxu1  ;;  %v3064_v49 = vrot.slane %v3058_v6, 7 }
0x163f   : > { %v2985_v50 = vpop.f32.mrb[24].mxu0  ;;  %v3217_v3 = vpop.f32.mrb[32].mxu1 }
0x1640   : > { %v3065_v51 = vsel %vm2411_vm6, %v3064_v49, %v2985_v50  ;;  %v4225_v52 = vpop.f32.mrb[25].mxu0  ;;  %v4240_v42 = vpop.f32.mrb[33].mxu1  ;;  %v3224_v54 = vsel %vm2238_vm4, %v3217_v3, -inf }
0x1641   : > { %3068 = vst.msk [vmem:[#allocation4 + $0x4] sm:$0x3] %vm902_vm3, %v3065_v51  ;;  %3225 = vmax.xlane.f32.xlu0 %v3224_v54 }
0x1643   : > { %v3145_v2 = vpop.f32.mrb[26].mxu0 }
0x1644   : > { %v4235_v23 = vpop.f32.mrb[27].mxu0  ;;  %v3221_v55 = vsel %vm2238_vm4, %v3145_v2, -inf }
0x1645   : > { %3222 = vmax.xlane.f32.xlu1 %v3221_v55 }
0x1648   : > { %v3398_v12 = vld [vmem:[#allocation4 + $0x4] sm:$0x3] }
0x16ce   : > { %v3226_v56 = vpop.xlane.xlu0 %3225 }
0x16cf   : > { %v3228_v59 = vsub.f32 %v3217_v3, %v3226_v56 }
0x16d1   : > { %v3231_v41 = vmul.f32 1.442695, %v3228_v59 }
0x16d2   : > { %v3223_v27 = vpop.xlane.xlu1 %3222 }
0x16d3   : > { %4598 = vpow2.f32 %v3231_v41  ;;  %v3227_v22 = vsub.f32 %v3145_v2, %v3223_v27 }
0x16d5   : > { %v3229_v53 = vmul.f32 1.442695, %v3227_v22 }
0x16d7   : > { %4600 = vpow2.f32 %v3229_v53 }
0x16dd   : > { %v4599_v33 = vpop.eup %4598 }
0x16de   : > { %v3236_v58 = vsel %vm2238_vm4, %v4599_v33, 0.0 }
0x16df   : > { %3237 = vadd.xlane.f32.xlu0 %v3236_v58 }
0x16e1   : > { %v4601_v57 = vpop.eup %4600 }
0x16e2   : > { %v3233_v63 = vsel %vm2238_vm4, %v4601_v57, 0.0 }
0x16e3   : > { %3234 = vadd.xlane.f32.xlu1 %v3233_v63 }
0x176c   : > { %v3238_v47 = vpop.xlane.xlu0 %3237 }
0x176d   : > { %4602 = vrcp.f32 %v3238_v47 }
0x1770   : > { %v3235_v60 = vpop.xlane.xlu1 %3234 }
0x1771   : > { %4604 = vrcp.f32 %v3235_v60 }
0x1777   : > { %v4603_v0 = vpop.eup %4602 }
0x1778   : > { %v3242_v61 = vmul.f32 %v4603_v0, %v4599_v33 }
0x177a   : > { %4249 = vmatmul.mubr.msk.f32.vlgmr.msra.gmra.mrb[34].mxu1 %vm2261_vm5, %v3242_v61 }
0x177b   : > { %v4605_v62 = vpop.eup %4604 }
0x177c   : > { %v3241_v1 = vmul.f32 %v4605_v62, %v4601_v57 }
0x177e   : > { %4244 = vmatmul.mubr.msk.f32.vlgmr.msra.gmra.mrb[28].mxu0 %vm2261_vm5, %v3241_v1 }
0x177f   : > { %4259 = vmatprep.mubr.msk.f32.mxu0 %vm4961_vm1, %v4962_v9  ;;  %4377 = vmatpush3.bf16.msra.mxu0 %v4376_v18 }
0x1780   : > { %4378 = vmatprep.subr.bf16.mxu0 %v4960_v8 }
0x1783   : > { %4380 = vmatpush3.bf16.msra.mxu0 %v4379_v20 }
0x1784   : > { %4381 = vmatprep.subr.bf16.mxu0 %v4960_v8 }
0x1786   : > { %4260 = vmatmul.mubr.msk.f32.vlgmr.msra.gmra.mrb[30].mxu0 %vm533_vm2, %v5635_v43  ;;  %v3397_v43 = vld [vmem:[#allocation4 + $0x2] sm:$0x3] }
0x1787   : > { %4383 = vmatpush3.bf16.msra.mxu0 %v4382_v31  ;;  %4270 = vmatprep.mubr.msk.f32.mxu0 %vm4961_vm1, %v4962_v9  ;;  %v3474_v24 = vcombine.low %v3396_v30, %v3397_v43 }
0x1788   : > { %4384 = vmatprep.subr.bf16.mxu0 %v4960_v8 }
0x1789   : > { %v3482_v9 = vrot.slane %v3474_v24, %v5630_v28 }
0x178b   : > { %4386 = vmatpush3.bf16.msra.mxu0 %v4385_v21 }
0x184d   : > { %v3385_v14 = vpop.f32.mrb[34].mxu1 }
0x184e   : > { %v4250_v15 = vpop.f32.mrb[35].mxu1  ;;  %v3391_v16 = vrot.slane %v3385_v14, 7 }
0x1851   : > { %v3312_v17 = vpop.f32.mrb[28].mxu0 }
0x1852   : > { %v3392_v10 = vsel %vm2411_vm6, %v3391_v16, %v3312_v17  ;;  %v4245_v11 = vpop.f32.mrb[29].mxu0 }
0x1853   : > { %3395 = vst.msk [vmem:[#allocation4 + $0x6] sm:$0x3] %vm902_vm3, %v3392_v10 }
0x185a   : > { %v3399_v13 = vld [vmem:[#allocation4 + $0x6] sm:$0x3] }
0x185b   : > { %v3475_v39 = vcombine.low %v3398_v12, %v3399_v13 }
0x185d   : > { %v3489_v8 = vrot.slane %v3475_v39, %v5630_v28 }
0x185f   : > { %v3490_v25 = vcombine.low %v3482_v9, %v3489_v8 }
0x1861   : > { %4271 = vmatmul.mubr.msk.f32.vlgmr.msra.gmra.mrb[30].mxu0 %vm533_vm2, %v3490_v25 }
0x1862   : > { %4847 = shalt.err (!%p4844_p9)
}
0x1863   : > { %s5913_s30 = sld [smem:[#allocation31_spill]]  ;;  %p5914_p6 = pmov %p5912_p13 }
0x1869   : > { %s4848_s23 = scalar_lea.hbm %s5913_s30, 64 }
0x186a   : > { %p4849_p4 = scmp.ne.s32.totalorder %s5913_s30, %s4848_s23  ;;  %p4854_p5 = scmp.lt.u32.totalorder %s4848_s23, %s5913_s30 }
0x186c   : > { %p4850_p2 = pnand %p4849_p4, %p5914_p6 }
0x186e   : > { %p4851_p8 = pneg %p4850_p2 }
0x1870   : > { %p4856_p1 = pnand %p4854_p5, %p4851_p8 }
0x1872   : > { %4859 = shalt.err (!%p4856_p1)
}
0x1873   : > { %s5887_s25 = smov 2   ;;  %p5915_p11 = pmov %p5914_p6 }
0x1874   : > { %s3856_s29 = sshll.u32 %s5047_s19, 7  ;;  %s3604_s23 = sshll.u32 %s5342_s20, 4  ;;  %s5814_s23 = int_to_ptr.vmem [resolvable:$true] %s3604_s23 }
0x1875   : > { %4421 = dma.vmem_to_hbm [thread:$0]  (%p5915_p11), %s3618_s22, 64, %s5913_s30, [#allocation21], %s5886_s21, %s5886_s21, %s5887_s25  }
0x1876   : > { %s5916_s12 = sld [smem:[#allocation30_spill]]  ;;  %s3591_s17 = scalar_lea.sflag [#allocation7], %s5316_s18 }
0x1877   : > { %s4860_s10 = scalar_lea.vmem %s5814_s23, 128  ;;  %p5917_p0 = scmp.ne.s32.totalorder %s5897_s27, 0 }
0x1878   : > { %p4861_p13 = scmp.ne.s32.totalorder %s5814_s23, %s4860_s10  ;;  %s4970_s9 = smov [#allocation19]  }
0x1879   : > { %s4864_s21 = sshll.u32 %s4970_s9, 4  ;;  %s4865_s21 = int_to_ptr.vmem [resolvable:$false] %s4864_s21 }
0x187a   : > { %p4862_p12 = pnand %p4861_p13, %p5917_p0  ;;  %s4866_s25 = scalar_lea.vmem %s4865_s21, 256 }
0x187b   : > { %p4867_p10 = scmp.lt.s32.totalorder %s5814_s23, %s4865_s21  ;;  %p4868_p3 = scmp.lt.s32.totalorder %s4866_s25, %s4860_s10 }
0x187c   : > { %s5812_s1 = scalar_lea.hbm %s5916_s12, %s3856_s29  ;;  %p4863_p7 = pneg %p4862_p12 }
0x187d   : > { %p4869_p9 = por %p4868_p3, %p4867_p10 }
0x187f   : > { %p4870_p4 = pnand %p4869_p9, %p4863_p7 }
0x1934   : > { %v3559_v26 = vpop.f32.mrb[30].mxu0 }
0x1935   : > { %4606 = vtanh.f32 %v3559_v26  ;;  %v4272_v29 = vpop.f32.mrb[31].mxu0 }
0x193f   : > { %v4607_v32 = vpop.eup %4606 }
0x1940   : > { %v3565_v38 = vcombine.high %v4607_v32, %v4607_v32  ;;  %v3572_v34 = vrot.slane %v4607_v32, %v5630_v28 }
0x1942   : > { %v3579_v35 = vrot.slane %v3565_v38, %v5630_v28  ;;  %v3580_v37 = vcombine.high %v3572_v34, %v3572_v34  ;;  %3586 = vst.msk [vmem:[%s5342_s20] sm:$0x3] %vm902_vm3, %v3572_v34 }
0x1944   : > { %v3581_v36 = vcombine.high %v3579_v35, %v3579_v35  ;;  %3587 = vst.msk [vmem:[%s5342_s20 + $0x2] sm:$0x3] %vm902_vm3, %v3580_v37  ;;  %3588 = vst.msk [vmem:[%s5342_s20 + $0x4] sm:$0x3] %vm902_vm3, %v3579_v35 }
0x1946   : > { %3589 = vst.msk [vmem:[%s5342_s20 + $0x6] sm:$0x3] %vm902_vm3, %v3581_v36 }
0x1947   : > { %4873 = shalt.err (!%p4870_p4)
}
0x1948   : > { %s4874_s20 = scalar_lea.hbm %s5812_s1, 128  ;;  %s4878_s26 = scalar_lea.hbm %s5916_s12, 256 }
0x1949   : > { %p4875_p6 = scmp.ne.s32.totalorder %s5812_s1, %s4874_s20  ;;  %p4879_p5 = scmp.lt.u32.totalorder %s5812_s1, %s5916_s12 }
0x194a   : > { %p4880_p1 = scmp.lt.u32.totalorder %s4878_s26, %s4874_s20  ;;  %p4882_p13 = scmp.lt.u32.totalorder %s4874_s20, %s5812_s1 }
0x194b   : > { %p4876_p2 = pnand %p4875_p6, %p5917_p0 }
0x194c   : > { %p4881_p11 = por %p4880_p1, %p4879_p5 }
0x194d   : > { %p4877_p8 = pneg %p4876_p2 }
0x194e   : > { %p4883_p12 = por %p4882_p13, %p4881_p11 }
0x1950   : > { %p4884_p7 = pnand %p4883_p12, %p4877_p8 }
0x1952   : > { %4887 = shalt.err (!%p4884_p7)
}
0x1953   : > { %s5918_s25 = smov 2   ;;  %s5919_s10 = smov 32  }
0x1954   : > { %4419 = dma.vmem_to_hbm [thread:$0]  (%p5917_p0), %s5814_s23, 128, %s5812_s1, %s3591_s17, %s5919_s10, %s5919_s10, %s5918_s25  }
0x1955   : > { %p5920_p10 = scmp.eq.s32.totalorder %s5047_s19, 1 }
0x1957   : > { %4925 = dma.done.wait (%p5920_p10), [#allocation21], 64   ;;  %p5921_p3 = pmov %p5920_p10 }
0x1959   : > { %4927 = vsyncadd (%p5921_p3), [#allocation21], 4294967232 }
0x195a PF: > { %s3636_s20 = sand.u32 1, %s4934_s13   ;;  %p5922_p9 = scmp.ne.s32.totalorder %s5898_s28, 0 }
0x195b   : > { %p5923_p4 = scmp.ge.s32.totalorder %s4946_s16, 2  ;;  %s3637_s27 = scalar_lea.sflag [#allocation7], %s3636_s20 }
0x195d   : > { %p4452_p6 = pnand %p5923_p4, %p5922_p9 }
0x195f   : > { %4929 = dma.done.wait (!%p4452_p6), %s3637_s27, 128  }
0x1960   : > { %4931 = vsyncadd (!%p4452_p6), %s3637_s27, 4294967168  ;;  %p29_p0 = scmp.ge.s32.totalorder %s5238_s11, 4   ;;  %s5924_s13 = smov %s4938_s14 }
0x1961   : > { %s5925_s14 = smov %s4942_s15  ;;  %s5926_s15 = smov %s5250_s24 }
0x1962   : > { %s5927_s16 = smov %s5238_s11  ;;  %31 = sbr.rel (!%p29_p0) target bundleno = 14 (0xe), region = 158 }
0x1969   :  { %3642 = vsyncpa [#allocation6], 1 }
0x196a   :  { %3644 = vsyncpa [#allocation6 + $0x1], 1 }
0x196b   :  { %3645 = vsyncpa [#allocation9], 1 }
0x196c   :  { %3646 = vsyncpa [#allocation12], 1 }
0x196d   :  { %3647 = vsyncpa [#allocation15], 1 }
0x196e   :  { %3648 = vsyncpa [#allocation18], 1 }
0x196f   :  { %3649 = vsyncpa [#allocation7], 1 }
0x1970   :  { %3651 = vsyncpa [#allocation7 + $0x1], 1 }
0x1971   :  { %3652 = vsyncpa [#allocation21], 1 }

</bundles_post_ra>
